<compile_context>
chip_gen: v5e
topology: v5e:2x2
jax: 0.10.0
libtpu: 0.0.40
codegen_flags: <defaults>
</compile_context>

<pallas_src>
import numpy as np
import jax
import jax.numpy as jnp
from jax.experimental import pallas as pl
from jax.experimental.pallas import tpu as pltpu

_EPS = 1e-5                                   # nn.InstanceNorm2d default eps
_V = (0.125, 0.375, 0.375, 0.125)             # [1,3,3,1]/8  (separable BlurPool taps)
_BLUR_A = (1.0, 3.0, 3.0, 1.0)                # for the NumPy reference


def _taps(t):
    """ConvTranspose2d(k=4,s=2,p=1) taps that hit sub-pixel phase t (t in {0,1}).

    Returns ((kernel_index, offset_into_zero_padded_input), ...).  Shared by the
    kernel (patch offsets) and the wrapper (weight stacking) so the K-stacking
    order always matches.
    """
    return tuple((k, 1 + (t + 1 - k) // 2) for k in (1 - t, 3 - t))


# -----------------------------------------------------------------------------------
# Fused kernel (one batch image per grid step).
#   x_ref   : (H, W, Cin)          bf16   input image
#   w_ref   : (4, 4*Cin, Cout)     bf16   per-phase K-stacked transposed-conv weights
#   skip_ref: (H, 2, W, 2*Cs)      f32    skip features in sub-pixel phase layout
#   out_ref : (H, 2, W, 2*(Cout+Cs)) f32  [a, r, b, s*Ctot+c] == final[2a+r, 2b+s, c]
# -----------------------------------------------------------------------------------
def _unet_up_kernel(x_ref, w_ref, skip_ref, out_ref):
    H, W, Cin = x_ref.shape
    Cout = w_ref.shape[-1]
    Ctot = out_ref.shape[-1] // 2
    Cs = Ctot - Cout
    v0, v1, v2, v3 = _V

    # ---- zero-pad x by 1 pixel on each spatial side, entirely in VMEM -------------
    x = x_ref[...]                                           # (H, W, Cin) bf16
    zr = jnp.zeros((1, W, Cin), x.dtype)
    xp = jnp.concatenate([zr, x, zr], axis=0)                # (H+2, W, Cin)
    zc = jnp.zeros((H + 2, 1, Cin), x.dtype)
    xp = jnp.concatenate([zc, xp, zc], axis=1)               # (H+2, W+2, Cin)

    # 3 column-shifted copies shared by all sub-pixel phases (3 relayouts, not 16).
    xc = [xp[:, dc:dc + W, :] for dc in range(3)]            # each (H+2, W, Cin)

    # ---- ConvTranspose2d(4,2,1): one (H*W, 4*Cin)@(4*Cin, Cout) bf16 matmul/phase --
    # P[(r, s)][a, b, :] == deconv_out[2a+r, 2b+s, :]   (f32 accumulation)
    P = {}
    for r in range(2):
        for s in range(2):
            pieces = [xc[dc][dr:dr + H]
                      for (_, dr) in _taps(r) for (_, dc) in _taps(s)]
            lhs = jnp.concatenate(pieces, axis=-1).reshape(H * W, 4 * Cin)
            P[(r, s)] = jnp.dot(
                lhs, w_ref[2 * r + s],
                preferred_element_type=jnp.float32).reshape(H, W, Cout)

    # ---- BlurPool(4x4, stride=1, reflect pad (1,2)) — separable, in phase space ---
    # Vertical pass (mixes full-res rows; reflection folded into the row picks).
    T = {}
    for s in range(2):
        p0, p1 = P[(0, s)], P[(1, s)]
        p1_um = jnp.concatenate([p1[0:1], p1[:H - 1]], axis=0)        # p1[a-1] (refl)
        p0_dp = jnp.concatenate([p0[1:], p0[H - 1:H]], axis=0)        # p0[a+1] (refl)
        p1_dp = jnp.concatenate([p1[1:], p1[H - 2:H - 1]], axis=0)    # p1[a+1] (refl)
        T[(0, s)] = v0 * p1_um + v1 * p0 + v2 * p1 + v3 * p0_dp
        T[(1, s)] = v0 * p0 + v1 * p1 + v2 * p0_dp + v3 * p1_dp

    # Horizontal pass (mixes full-res columns).
    B = {}
    for r in range(2):
        q0, q1 = T[(r, 0)], T[(r, 1)]
        q1_lm = jnp.concatenate([q1[:, 0:1], q1[:, :W - 1]], axis=1)       # q1[b-1]
        q0_rp = jnp.concatenate([q0[:, 1:], q0[:, W - 1:W]], axis=1)       # q0[b+1]
        q1_rp = jnp.concatenate([q1[:, 1:], q1[:, W - 2:W - 1]], axis=1)   # q1[b+1]
        B[(r, 0)] = v0 * q1_lm + v1 * q0 + v2 * q1 + v3 * q0_rp
        B[(r, 1)] = v0 * q0 + v1 * q1 + v2 * q0_rp + v3 * q1_rp

    # ---- InstanceNorm2d(eps=1e-5, affine=False): stats over the full OHxOW image --
    npix = 4.0 * H * W
    mean = sum(jnp.sum(B[k], axis=(0, 1), keepdims=True) for k in B) / npix
    var = sum(jnp.sum(jnp.square(B[k] - mean), axis=(0, 1), keepdims=True)
              for k in B) / npix
    scale = jax.lax.rsqrt(var + _EPS)

    # ---- ReLU + fused channel concat with skip; one lane-dense store per row phase -
    for r in range(2):
        lanes = []
        for s in range(2):
            y = jnp.maximum((B[(r, s)] - mean) * scale, 0.0)
            sk = skip_ref[:, r, :, s * Cs:(s + 1) * Cs].astype(jnp.float32)
            lanes.append(y)
            lanes.append(sk)
        out_ref[:, r, :, :] = jnp.concatenate(lanes, axis=-1)


# -----------------------------------------------------------------------------------
# Wrapper (PyTorch-style NCHW in / NCHW out).
# -----------------------------------------------------------------------------------
def unet_up_forward(x_nchw, skip_nchw, weight):
    """x: (N,Cin,H,W), skip: (N,Cs,2H,2W), weight: (Cin,Cout,4,4) -> (N,Cout+Cs,2H,2W)."""
    N, Cin, H, W = x_nchw.shape
    Cout = weight.shape[1]
    Cs = skip_nchw.shape[1]
    OH, OW = 2 * H, 2 * W
    Ctot = Cout + Cs

    # NCHW -> NHWC boundary glue; the bf16 cast of the matmul operand fuses into it.
    x = jnp.transpose(x_nchw, (0, 2, 3, 1)).astype(jnp.bfloat16)        # (N,H,W,Cin)
    skip = jnp.transpose(skip_nchw, (0, 2, 3, 1)).astype(jnp.float32)   # (N,OH,OW,Cs)
    # Sub-pixel phase layout for the kernel: pure row-major reshape (free).
    skip_ph = skip.reshape(N, H, 2, W, 2 * Cs)

    # Per-phase K-stacked weights: (4, 4*Cin, Cout); stacking order matches _taps().
    w = jnp.transpose(weight, (2, 3, 0, 1)).astype(jnp.bfloat16)        # (4,4,Cin,Cout)
    w_stacked = jnp.stack(
        [jnp.concatenate(
            [w[kh, kw] for (kh, _) in _taps(r) for (kw, _) in _taps(s)], axis=0)
         for r in range(2) for s in range(2)],
        axis=0)                                                         # (4,4Cin,Cout)

    out_ph = pl.pallas_call(
        _unet_up_kernel,
        out_shape=jax.ShapeDtypeStruct((N, H, 2, W, 2 * Ctot), jnp.float32),
        grid=(N,),
        in_specs=[
            pl.BlockSpec((None, H, W, Cin), lambda n: (n, 0, 0, 0)),
            pl.BlockSpec((4, 4 * Cin, Cout), lambda n: (0, 0, 0)),
            pl.BlockSpec((None, H, 2, W, 2 * Cs), lambda n: (n, 0, 0, 0, 0)),
        ],
        out_specs=pl.BlockSpec((None, H, 2, W, 2 * Ctot), lambda n: (n, 0, 0, 0, 0)),
        compiler_params=pltpu.CompilerParams(
            dimension_semantics=("parallel",),
            vmem_limit_bytes=48 * 1024 * 1024,
        ),
    )(x, w_stacked, skip_ph)

    # Phase layout -> NHWC is a free row-major reshape; NHWC -> NCHW is boundary glue.
    out = out_ph.reshape(N, OH, OW, Ctot)
    return jnp.transpose(out, (0, 3, 1, 2))


# -----------------------------------------------------------------------------------
# Pure NumPy (float64) reference mirroring the PyTorch module semantics.
# -----------------------------------------------------------------------------------
def _ref_forward(x, skip, wt):
    x = x.astype(np.float64)
    wt = wt.astype(np.float64)
    N, Cin, H, W = x.shape
    Cout = wt.shape[1]
    OH, OW = 2 * H, 2 * W
    up = np.zeros((N, Cout, OH, OW), np.float64)
    for ih in range(H):
        for iw in range(W):
            for kh in range(4):
                for kw in range(4):
                    oh = 2 * ih - 1 + kh
                    ow = 2 * iw - 1 + kw
                    if 0 <= oh < OH and 0 <= ow < OW:
                        up[:, :, oh, ow] += x[:, :, ih, iw] @ wt[:, :, kh, kw]
    a = np.array(_BLUR_A, np.float64)
    filt = np.outer(a, a)
    filt /= filt.sum()
    upad = np.pad(up, ((0, 0), (0, 0), (1, 2), (1, 2)), mode="reflect")
    blur = np.zeros_like(up)
    for fh in range(4):
        for fw in range(4):
            blur += filt[fh, fw] * upad[:, :, fh:fh + OH, fw:fw + OW]
    mean = blur.mean(axis=(2, 3), keepdims=True)
    var = blur.var(axis=(2, 3), keepdims=True)
    y = np.maximum((blur - mean) / np.sqrt(var + _EPS), 0.0)
    return np.concatenate([y, skip.astype(np.float64)], axis=1)


if __name__ == "__main__":
    key = jax.random.PRNGKey(0)
    k1, k2, k3 = jax.random.split(key, 3)

    N, Cin, Cout, H, W = 2, 8, 4, 8, 8
    # Round the matmul operands to bf16 up-front so the f64 reference sees exactly
    # what the MXU sees (bf16 x bf16 products are exact in f32 accumulation).
    x = jax.random.normal(k1, (N, Cin, H, W), jnp.float32)
    x = x.astype(jnp.bfloat16).astype(jnp.float32)
    skip = jax.random.normal(k2, (N, Cout, 2 * H, 2 * W), jnp.float32)
    weight = jax.random.normal(k3, (Cin, Cout, 4, 4), jnp.float32) * 0.1
    weight = weight.astype(jnp.bfloat16).astype(jnp.float32)

    out = jax.jit(unet_up_forward)(x, skip, weight)
    out = jax.block_until_ready(out)

    ref = _ref_forward(np.asarray(x), np.asarray(skip), np.asarray(weight))
    np.testing.assert_allclose(np.asarray(out, np.float64), ref, rtol=1e-3, atol=1e-3)
    print("KERNEL_OK")
</pallas_src>

<mosaic_0001>
module attributes {stable_mosaic.version = 11 : i64} {
  func.func @_unet_up_kernel(%arg0: i32, %arg1: memref<1x8x8x8xbf16, #tpu.memory_space<vmem>>, %arg2: memref<4x32x4xbf16, #tpu.memory_space<vmem>>, %arg3: memref<1x8x2x8x8xf32, #tpu.memory_space<vmem>>, %arg4: memref<1x8x2x8x16xf32, #tpu.memory_space<vmem>>) attributes {dimension_semantics = [#tpu.dimension_semantics<parallel>], iteration_bounds = array<i64: 2>, scalar_prefetch = 0 : i64, scratch_operands = 0 : i64, tpu.core_type = #tpu.core_type<tc>, window_params = [{transform_indices = @transform_0, window_bounds = array<i64: 1, 8, 8, 8>}, {pipeline_mode = #tpu.pipeline_mode<synchronous>, transform_indices = @transform_1, window_bounds = array<i64: 4, 32, 4>}, {transform_indices = @transform_2, window_bounds = array<i64: 1, 8, 2, 8, 8>}, {transform_indices = @transform_3, window_bounds = array<i64: 1, 8, 2, 8, 16>}]} {
    %c0 = arith.constant 0 : index
    %c0_0 = arith.constant 0 : index
    %c0_1 = arith.constant 0 : index
    %c0_2 = arith.constant 0 : index
    %0 = vector.load %arg1[%c0, %c0_0, %c0_1, %c0_2] : memref<1x8x8x8xbf16, #tpu.memory_space<vmem>>, vector<1x8x8x8xbf16>
    %1 = vector.shape_cast %0 : vector<1x8x8x8xbf16> to vector<8x8x8xbf16>
    %cst = arith.constant 0.000000e+00 : bf16
    %2 = vector.broadcast %cst : bf16 to vector<1x8x8xbf16>
    %3 = tpu.concatenate %2, %1, %2 in 0 : vector<1x8x8xbf16>, vector<8x8x8xbf16>, vector<1x8x8xbf16> -> vector<10x8x8xbf16>
    %cst_3 = arith.constant 0.000000e+00 : bf16
    %4 = vector.broadcast %cst_3 : bf16 to vector<10x1x8xbf16>
    %5 = tpu.concatenate %4, %3, %4 in 1 : vector<10x1x8xbf16>, vector<10x8x8xbf16>, vector<10x1x8xbf16> -> vector<10x10x8xbf16>
    %6 = vector.extract_strided_slice %5 {offsets = [0, 0, 0], sizes = [10, 8, 8], strides = [1, 1, 1]} : vector<10x10x8xbf16> to vector<10x8x8xbf16>
    %7 = vector.extract_strided_slice %5 {offsets = [0, 1, 0], sizes = [10, 8, 8], strides = [1, 1, 1]} : vector<10x10x8xbf16> to vector<10x8x8xbf16>
    %8 = vector.extract_strided_slice %5 {offsets = [0, 2, 0], sizes = [10, 8, 8], strides = [1, 1, 1]} : vector<10x10x8xbf16> to vector<10x8x8xbf16>
    %9 = vector.extract_strided_slice %7 {offsets = [1, 0, 0], sizes = [8, 8, 8], strides = [1, 1, 1]} : vector<10x8x8xbf16> to vector<8x8x8xbf16>
    %10 = vector.extract_strided_slice %6 {offsets = [1, 0, 0], sizes = [8, 8, 8], strides = [1, 1, 1]} : vector<10x8x8xbf16> to vector<8x8x8xbf16>
    %11 = vector.extract_strided_slice %7 {offsets = [0, 0, 0], sizes = [8, 8, 8], strides = [1, 1, 1]} : vector<10x8x8xbf16> to vector<8x8x8xbf16>
    %12 = vector.extract_strided_slice %6 {offsets = [0, 0, 0], sizes = [8, 8, 8], strides = [1, 1, 1]} : vector<10x8x8xbf16> to vector<8x8x8xbf16>
    %13 = tpu.concatenate %9, %10, %11, %12 in 2 : vector<8x8x8xbf16>, vector<8x8x8xbf16>, vector<8x8x8xbf16>, vector<8x8x8xbf16> -> vector<8x8x32xbf16>
    %14 = vector.shape_cast %13 : vector<8x8x32xbf16> to vector<64x32xbf16>
    %c0_4 = arith.constant 0 : index
    %c0_5 = arith.constant 0 : index
    %c0_6 = arith.constant 0 : index
    %15 = vector.load %arg2[%c0_4, %c0_5, %c0_6] : memref<4x32x4xbf16, #tpu.memory_space<vmem>>, vector<1x32x4xbf16>
    %16 = vector.shape_cast %15 : vector<1x32x4xbf16> to vector<32x4xbf16>
    %cst_7 = arith.constant dense<0.000000e+00> : vector<64x4xf32>
    %17 = tpu.matmul %14, %16, %cst_7 {dimension_numbers = #tpu.dot_dimension_numbers<[1], [0], [0], [1], [0, 0, 1, 1], [], []>} : vector<64x32xbf16>, vector<32x4xbf16>, vector<64x4xf32> -> vector<64x4xf32>
    %18 = vector.shape_cast %17 : vector<64x4xf32> to vector<8x8x4xf32>
    %19 = vector.extract_strided_slice %8 {offsets = [1, 0, 0], sizes = [8, 8, 8], strides = [1, 1, 1]} : vector<10x8x8xbf16> to vector<8x8x8xbf16>
    %20 = vector.extract_strided_slice %7 {offsets = [1, 0, 0], sizes = [8, 8, 8], strides = [1, 1, 1]} : vector<10x8x8xbf16> to vector<8x8x8xbf16>
    %21 = vector.extract_strided_slice %8 {offsets = [0, 0, 0], sizes = [8, 8, 8], strides = [1, 1, 1]} : vector<10x8x8xbf16> to vector<8x8x8xbf16>
    %22 = vector.extract_strided_slice %7 {offsets = [0, 0, 0], sizes = [8, 8, 8], strides = [1, 1, 1]} : vector<10x8x8xbf16> to vector<8x8x8xbf16>
    %23 = tpu.concatenate %19, %20, %21, %22 in 2 : vector<8x8x8xbf16>, vector<8x8x8xbf16>, vector<8x8x8xbf16>, vector<8x8x8xbf16> -> vector<8x8x32xbf16>
    %24 = vector.shape_cast %23 : vector<8x8x32xbf16> to vector<64x32xbf16>
    %c1 = arith.constant 1 : index
    %c0_8 = arith.constant 0 : index
    %c0_9 = arith.constant 0 : index
    %25 = vector.load %arg2[%c1, %c0_8, %c0_9] : memref<4x32x4xbf16, #tpu.memory_space<vmem>>, vector<1x32x4xbf16>
    %26 = vector.shape_cast %25 : vector<1x32x4xbf16> to vector<32x4xbf16>
    %cst_10 = arith.constant dense<0.000000e+00> : vector<64x4xf32>
    %27 = tpu.matmul %24, %26, %cst_10 {dimension_numbers = #tpu.dot_dimension_numbers<[1], [0], [0], [1], [0, 0, 1, 1], [], []>} : vector<64x32xbf16>, vector<32x4xbf16>, vector<64x4xf32> -> vector<64x4xf32>
    %28 = vector.shape_cast %27 : vector<64x4xf32> to vector<8x8x4xf32>
    %29 = vector.extract_strided_slice %7 {offsets = [2, 0, 0], sizes = [8, 8, 8], strides = [1, 1, 1]} : vector<10x8x8xbf16> to vector<8x8x8xbf16>
    %30 = vector.extract_strided_slice %6 {offsets = [2, 0, 0], sizes = [8, 8, 8], strides = [1, 1, 1]} : vector<10x8x8xbf16> to vector<8x8x8xbf16>
    %31 = vector.extract_strided_slice %7 {offsets = [1, 0, 0], sizes = [8, 8, 8], strides = [1, 1, 1]} : vector<10x8x8xbf16> to vector<8x8x8xbf16>
    %32 = vector.extract_strided_slice %6 {offsets = [1, 0, 0], sizes = [8, 8, 8], strides = [1, 1, 1]} : vector<10x8x8xbf16> to vector<8x8x8xbf16>
    %33 = tpu.concatenate %29, %30, %31, %32 in 2 : vector<8x8x8xbf16>, vector<8x8x8xbf16>, vector<8x8x8xbf16>, vector<8x8x8xbf16> -> vector<8x8x32xbf16>
    %34 = vector.shape_cast %33 : vector<8x8x32xbf16> to vector<64x32xbf16>
    %c2 = arith.constant 2 : index
    %c0_11 = arith.constant 0 : index
    %c0_12 = arith.constant 0 : index
    %35 = vector.load %arg2[%c2, %c0_11, %c0_12] : memref<4x32x4xbf16, #tpu.memory_space<vmem>>, vector<1x32x4xbf16>
    %36 = vector.shape_cast %35 : vector<1x32x4xbf16> to vector<32x4xbf16>
    %cst_13 = arith.constant dense<0.000000e+00> : vector<64x4xf32>
    %37 = tpu.matmul %34, %36, %cst_13 {dimension_numbers = #tpu.dot_dimension_numbers<[1], [0], [0], [1], [0, 0, 1, 1], [], []>} : vector<64x32xbf16>, vector<32x4xbf16>, vector<64x4xf32> -> vector<64x4xf32>
    %38 = vector.shape_cast %37 : vector<64x4xf32> to vector<8x8x4xf32>
    %39 = vector.extract_strided_slice %8 {offsets = [2, 0, 0], sizes = [8, 8, 8], strides = [1, 1, 1]} : vector<10x8x8xbf16> to vector<8x8x8xbf16>
    %40 = vector.extract_strided_slice %7 {offsets = [2, 0, 0], sizes = [8, 8, 8], strides = [1, 1, 1]} : vector<10x8x8xbf16> to vector<8x8x8xbf16>
    %41 = vector.extract_strided_slice %8 {offsets = [1, 0, 0], sizes = [8, 8, 8], strides = [1, 1, 1]} : vector<10x8x8xbf16> to vector<8x8x8xbf16>
    %42 = vector.extract_strided_slice %7 {offsets = [1, 0, 0], sizes = [8, 8, 8], strides = [1, 1, 1]} : vector<10x8x8xbf16> to vector<8x8x8xbf16>
    %43 = tpu.concatenate %39, %40, %41, %42 in 2 : vector<8x8x8xbf16>, vector<8x8x8xbf16>, vector<8x8x8xbf16>, vector<8x8x8xbf16> -> vector<8x8x32xbf16>
    %44 = vector.shape_cast %43 : vector<8x8x32xbf16> to vector<64x32xbf16>
    %c3 = arith.constant 3 : index
    %c0_14 = arith.constant 0 : index
    %c0_15 = arith.constant 0 : index
    %45 = vector.load %arg2[%c3, %c0_14, %c0_15] : memref<4x32x4xbf16, #tpu.memory_space<vmem>>, vector<1x32x4xbf16>
    %46 = vector.shape_cast %45 : vector<1x32x4xbf16> to vector<32x4xbf16>
    %cst_16 = arith.constant dense<0.000000e+00> : vector<64x4xf32>
    %47 = tpu.matmul %44, %46, %cst_16 {dimension_numbers = #tpu.dot_dimension_numbers<[1], [0], [0], [1], [0, 0, 1, 1], [], []>} : vector<64x32xbf16>, vector<32x4xbf16>, vector<64x4xf32> -> vector<64x4xf32>
    %48 = vector.shape_cast %47 : vector<64x4xf32> to vector<8x8x4xf32>
    %49 = vector.extract_strided_slice %38 {offsets = [0, 0, 0], sizes = [1, 8, 4], strides = [1, 1, 1]} : vector<8x8x4xf32> to vector<1x8x4xf32>
    %50 = vector.extract_strided_slice %38 {offsets = [0, 0, 0], sizes = [7, 8, 4], strides = [1, 1, 1]} : vector<8x8x4xf32> to vector<7x8x4xf32>
    %51 = tpu.concatenate %49, %50 in 0 : vector<1x8x4xf32>, vector<7x8x4xf32> -> vector<8x8x4xf32>
    %52 = vector.extract_strided_slice %18 {offsets = [1, 0, 0], sizes = [7, 8, 4], strides = [1, 1, 1]} : vector<8x8x4xf32> to vector<7x8x4xf32>
    %53 = vector.extract_strided_slice %18 {offsets = [7, 0, 0], sizes = [1, 8, 4], strides = [1, 1, 1]} : vector<8x8x4xf32> to vector<1x8x4xf32>
    %54 = tpu.concatenate %52, %53 in 0 : vector<7x8x4xf32>, vector<1x8x4xf32> -> vector<8x8x4xf32>
    %55 = vector.extract_strided_slice %38 {offsets = [1, 0, 0], sizes = [7, 8, 4], strides = [1, 1, 1]} : vector<8x8x4xf32> to vector<7x8x4xf32>
    %56 = vector.extract_strided_slice %38 {offsets = [6, 0, 0], sizes = [1, 8, 4], strides = [1, 1, 1]} : vector<8x8x4xf32> to vector<1x8x4xf32>
    %57 = tpu.concatenate %55, %56 in 0 : vector<7x8x4xf32>, vector<1x8x4xf32> -> vector<8x8x4xf32>
    %cst_17 = arith.constant 1.250000e-01 : f32
    %58 = vector.broadcast %cst_17 : f32 to vector<8x8x4xf32>
    %59 = arith.mulf %58, %51 : vector<8x8x4xf32>
    %cst_18 = arith.constant 3.750000e-01 : f32
    %60 = vector.broadcast %cst_18 : f32 to vector<8x8x4xf32>
    %61 = arith.mulf %60, %18 : vector<8x8x4xf32>
    %62 = arith.addf %59, %61 : vector<8x8x4xf32>
    %cst_19 = arith.constant 3.750000e-01 : f32
    %63 = vector.broadcast %cst_19 : f32 to vector<8x8x4xf32>
    %64 = arith.mulf %63, %38 : vector<8x8x4xf32>
    %65 = arith.addf %62, %64 : vector<8x8x4xf32>
    %cst_20 = arith.constant 1.250000e-01 : f32
    %66 = vector.broadcast %cst_20 : f32 to vector<8x8x4xf32>
    %67 = arith.mulf %66, %54 : vector<8x8x4xf32>
    %68 = arith.addf %65, %67 : vector<8x8x4xf32>
    %cst_21 = arith.constant 1.250000e-01 : f32
    %69 = vector.broadcast %cst_21 : f32 to vector<8x8x4xf32>
    %70 = arith.mulf %69, %18 : vector<8x8x4xf32>
    %cst_22 = arith.constant 3.750000e-01 : f32
    %71 = vector.broadcast %cst_22 : f32 to vector<8x8x4xf32>
    %72 = arith.mulf %71, %38 : vector<8x8x4xf32>
    %73 = arith.addf %70, %72 : vector<8x8x4xf32>
    %cst_23 = arith.constant 3.750000e-01 : f32
    %74 = vector.broadcast %cst_23 : f32 to vector<8x8x4xf32>
    %75 = arith.mulf %74, %54 : vector<8x8x4xf32>
    %76 = arith.addf %73, %75 : vector<8x8x4xf32>
    %cst_24 = arith.constant 1.250000e-01 : f32
    %77 = vector.broadcast %cst_24 : f32 to vector<8x8x4xf32>
    %78 = arith.mulf %77, %57 : vector<8x8x4xf32>
    %79 = arith.addf %76, %78 : vector<8x8x4xf32>
    %80 = vector.extract_strided_slice %48 {offsets = [0, 0, 0], sizes = [1, 8, 4], strides = [1, 1, 1]} : vector<8x8x4xf32> to vector<1x8x4xf32>
    %81 = vector.extract_strided_slice %48 {offsets = [0, 0, 0], sizes = [7, 8, 4], strides = [1, 1, 1]} : vector<8x8x4xf32> to vector<7x8x4xf32>
    %82 = tpu.concatenate %80, %81 in 0 : vector<1x8x4xf32>, vector<7x8x4xf32> -> vector<8x8x4xf32>
    %83 = vector.extract_strided_slice %28 {offsets = [1, 0, 0], sizes = [7, 8, 4], strides = [1, 1, 1]} : vector<8x8x4xf32> to vector<7x8x4xf32>
    %84 = vector.extract_strided_slice %28 {offsets = [7, 0, 0], sizes = [1, 8, 4], strides = [1, 1, 1]} : vector<8x8x4xf32> to vector<1x8x4xf32>
    %85 = tpu.concatenate %83, %84 in 0 : vector<7x8x4xf32>, vector<1x8x4xf32> -> vector<8x8x4xf32>
    %86 = vector.extract_strided_slice %48 {offsets = [1, 0, 0], sizes = [7, 8, 4], strides = [1, 1, 1]} : vector<8x8x4xf32> to vector<7x8x4xf32>
    %87 = vector.extract_strided_slice %48 {offsets = [6, 0, 0], sizes = [1, 8, 4], strides = [1, 1, 1]} : vector<8x8x4xf32> to vector<1x8x4xf32>
    %88 = tpu.concatenate %86, %87 in 0 : vector<7x8x4xf32>, vector<1x8x4xf32> -> vector<8x8x4xf32>
    %cst_25 = arith.constant 1.250000e-01 : f32
    %89 = vector.broadcast %cst_25 : f32 to vector<8x8x4xf32>
    %90 = arith.mulf %89, %82 : vector<8x8x4xf32>
    %cst_26 = arith.constant 3.750000e-01 : f32
    %91 = vector.broadcast %cst_26 : f32 to vector<8x8x4xf32>
    %92 = arith.mulf %91, %28 : vector<8x8x4xf32>
    %93 = arith.addf %90, %92 : vector<8x8x4xf32>
    %cst_27 = arith.constant 3.750000e-01 : f32
    %94 = vector.broadcast %cst_27 : f32 to vector<8x8x4xf32>
    %95 = arith.mulf %94, %48 : vector<8x8x4xf32>
    %96 = arith.addf %93, %95 : vector<8x8x4xf32>
    %cst_28 = arith.constant 1.250000e-01 : f32
    %97 = vector.broadcast %cst_28 : f32 to vector<8x8x4xf32>
    %98 = arith.mulf %97, %85 : vector<8x8x4xf32>
    %99 = arith.addf %96, %98 : vector<8x8x4xf32>
    %cst_29 = arith.constant 1.250000e-01 : f32
    %100 = vector.broadcast %cst_29 : f32 to vector<8x8x4xf32>
    %101 = arith.mulf %100, %28 : vector<8x8x4xf32>
    %cst_30 = arith.constant 3.750000e-01 : f32
    %102 = vector.broadcast %cst_30 : f32 to vector<8x8x4xf32>
    %103 = arith.mulf %102, %48 : vector<8x8x4xf32>
    %104 = arith.addf %101, %103 : vector<8x8x4xf32>
    %cst_31 = arith.constant 3.750000e-01 : f32
    %105 = vector.broadcast %cst_31 : f32 to vector<8x8x4xf32>
    %106 = arith.mulf %105, %85 : vector<8x8x4xf32>
    %107 = arith.addf %104, %106 : vector<8x8x4xf32>
    %cst_32 = arith.constant 1.250000e-01 : f32
    %108 = vector.broadcast %cst_32 : f32 to vector<8x8x4xf32>
    %109 = arith.mulf %108, %88 : vector<8x8x4xf32>
    %110 = arith.addf %107, %109 : vector<8x8x4xf32>
    %111 = vector.extract_strided_slice %99 {offsets = [0, 0, 0], sizes = [8, 1, 4], strides = [1, 1, 1]} : vector<8x8x4xf32> to vector<8x1x4xf32>
    %112 = vector.extract_strided_slice %99 {offsets = [0, 0, 0], sizes = [8, 7, 4], strides = [1, 1, 1]} : vector<8x8x4xf32> to vector<8x7x4xf32>
    %113 = tpu.concatenate %111, %112 in 1 : vector<8x1x4xf32>, vector<8x7x4xf32> -> vector<8x8x4xf32>
    %114 = vector.extract_strided_slice %68 {offsets = [0, 1, 0], sizes = [8, 7, 4], strides = [1, 1, 1]} : vector<8x8x4xf32> to vector<8x7x4xf32>
    %115 = vector.extract_strided_slice %68 {offsets = [0, 7, 0], sizes = [8, 1, 4], strides = [1, 1, 1]} : vector<8x8x4xf32> to vector<8x1x4xf32>
    %116 = tpu.concatenate %114, %115 in 1 : vector<8x7x4xf32>, vector<8x1x4xf32> -> vector<8x8x4xf32>
    %117 = vector.extract_strided_slice %99 {offsets = [0, 1, 0], sizes = [8, 7, 4], strides = [1, 1, 1]} : vector<8x8x4xf32> to vector<8x7x4xf32>
    %118 = vector.extract_strided_slice %99 {offsets = [0, 6, 0], sizes = [8, 1, 4], strides = [1, 1, 1]} : vector<8x8x4xf32> to vector<8x1x4xf32>
    %119 = tpu.concatenate %117, %118 in 1 : vector<8x7x4xf32>, vector<8x1x4xf32> -> vector<8x8x4xf32>
    %cst_33 = arith.constant 1.250000e-01 : f32
    %120 = vector.broadcast %cst_33 : f32 to vector<8x8x4xf32>
    %121 = arith.mulf %120, %113 : vector<8x8x4xf32>
    %cst_34 = arith.constant 3.750000e-01 : f32
    %122 = vector.broadcast %cst_34 : f32 to vector<8x8x4xf32>
    %123 = arith.mulf %122, %68 : vector<8x8x4xf32>
    %124 = arith.addf %121, %123 : vector<8x8x4xf32>
    %cst_35 = arith.constant 3.750000e-01 : f32
    %125 = vector.broadcast %cst_35 : f32 to vector<8x8x4xf32>
    %126 = arith.mulf %125, %99 : vector<8x8x4xf32>
    %127 = arith.addf %124, %126 : vector<8x8x4xf32>
    %cst_36 = arith.constant 1.250000e-01 : f32
    %128 = vector.broadcast %cst_36 : f32 to vector<8x8x4xf32>
    %129 = arith.mulf %128, %116 : vector<8x8x4xf32>
    %130 = arith.addf %127, %129 : vector<8x8x4xf32>
    %cst_37 = arith.constant 1.250000e-01 : f32
    %131 = vector.broadcast %cst_37 : f32 to vector<8x8x4xf32>
    %132 = arith.mulf %131, %68 : vector<8x8x4xf32>
    %cst_38 = arith.constant 3.750000e-01 : f32
    %133 = vector.broadcast %cst_38 : f32 to vector<8x8x4xf32>
    %134 = arith.mulf %133, %99 : vector<8x8x4xf32>
    %135 = arith.addf %132, %134 : vector<8x8x4xf32>
    %cst_39 = arith.constant 3.750000e-01 : f32
    %136 = vector.broadcast %cst_39 : f32 to vector<8x8x4xf32>
    %137 = arith.mulf %136, %116 : vector<8x8x4xf32>
    %138 = arith.addf %135, %137 : vector<8x8x4xf32>
    %cst_40 = arith.constant 1.250000e-01 : f32
    %139 = vector.broadcast %cst_40 : f32 to vector<8x8x4xf32>
    %140 = arith.mulf %139, %119 : vector<8x8x4xf32>
    %141 = arith.addf %138, %140 : vector<8x8x4xf32>
    %142 = vector.extract_strided_slice %110 {offsets = [0, 0, 0], sizes = [8, 1, 4], strides = [1, 1, 1]} : vector<8x8x4xf32> to vector<8x1x4xf32>
    %143 = vector.extract_strided_slice %110 {offsets = [0, 0, 0], sizes = [8, 7, 4], strides = [1, 1, 1]} : vector<8x8x4xf32> to vector<8x7x4xf32>
    %144 = tpu.concatenate %142, %143 in 1 : vector<8x1x4xf32>, vector<8x7x4xf32> -> vector<8x8x4xf32>
    %145 = vector.extract_strided_slice %79 {offsets = [0, 1, 0], sizes = [8, 7, 4], strides = [1, 1, 1]} : vector<8x8x4xf32> to vector<8x7x4xf32>
    %146 = vector.extract_strided_slice %79 {offsets = [0, 7, 0], sizes = [8, 1, 4], strides = [1, 1, 1]} : vector<8x8x4xf32> to vector<8x1x4xf32>
    %147 = tpu.concatenate %145, %146 in 1 : vector<8x7x4xf32>, vector<8x1x4xf32> -> vector<8x8x4xf32>
    %148 = vector.extract_strided_slice %110 {offsets = [0, 1, 0], sizes = [8, 7, 4], strides = [1, 1, 1]} : vector<8x8x4xf32> to vector<8x7x4xf32>
    %149 = vector.extract_strided_slice %110 {offsets = [0, 6, 0], sizes = [8, 1, 4], strides = [1, 1, 1]} : vector<8x8x4xf32> to vector<8x1x4xf32>
    %150 = tpu.concatenate %148, %149 in 1 : vector<8x7x4xf32>, vector<8x1x4xf32> -> vector<8x8x4xf32>
    %cst_41 = arith.constant 1.250000e-01 : f32
    %151 = vector.broadcast %cst_41 : f32 to vector<8x8x4xf32>
    %152 = arith.mulf %151, %144 : vector<8x8x4xf32>
    %cst_42 = arith.constant 3.750000e-01 : f32
    %153 = vector.broadcast %cst_42 : f32 to vector<8x8x4xf32>
    %154 = arith.mulf %153, %79 : vector<8x8x4xf32>
    %155 = arith.addf %152, %154 : vector<8x8x4xf32>
    %cst_43 = arith.constant 3.750000e-01 : f32
    %156 = vector.broadcast %cst_43 : f32 to vector<8x8x4xf32>
    %157 = arith.mulf %156, %110 : vector<8x8x4xf32>
    %158 = arith.addf %155, %157 : vector<8x8x4xf32>
    %cst_44 = arith.constant 1.250000e-01 : f32
    %159 = vector.broadcast %cst_44 : f32 to vector<8x8x4xf32>
    %160 = arith.mulf %159, %147 : vector<8x8x4xf32>
    %161 = arith.addf %158, %160 : vector<8x8x4xf32>
    %cst_45 = arith.constant 1.250000e-01 : f32
    %162 = vector.broadcast %cst_45 : f32 to vector<8x8x4xf32>
    %163 = arith.mulf %162, %79 : vector<8x8x4xf32>
    %cst_46 = arith.constant 3.750000e-01 : f32
    %164 = vector.broadcast %cst_46 : f32 to vector<8x8x4xf32>
    %165 = arith.mulf %164, %110 : vector<8x8x4xf32>
    %166 = arith.addf %163, %165 : vector<8x8x4xf32>
    %cst_47 = arith.constant 3.750000e-01 : f32
    %167 = vector.broadcast %cst_47 : f32 to vector<8x8x4xf32>
    %168 = arith.mulf %167, %147 : vector<8x8x4xf32>
    %169 = arith.addf %166, %168 : vector<8x8x4xf32>
    %cst_48 = arith.constant 1.250000e-01 : f32
    %170 = vector.broadcast %cst_48 : f32 to vector<8x8x4xf32>
    %171 = arith.mulf %170, %150 : vector<8x8x4xf32>
    %172 = arith.addf %169, %171 : vector<8x8x4xf32>
    %cst_49 = arith.constant dense<0.000000e+00> : vector<4xf32>
    %173 = vector.multi_reduction <add>, %130, %cst_49 [0, 1] : vector<8x8x4xf32> to vector<4xf32>
    %174 = vector.shape_cast %173 : vector<4xf32> to vector<1x1x4xf32>
    %cst_50 = arith.constant 0.000000e+00 : f32
    %175 = vector.broadcast %cst_50 : f32 to vector<1x1x4xf32>
    %176 = arith.addf %175, %174 : vector<1x1x4xf32>
    %cst_51 = arith.constant dense<0.000000e+00> : vector<4xf32>
    %177 = vector.multi_reduction <add>, %141, %cst_51 [0, 1] : vector<8x8x4xf32> to vector<4xf32>
    %178 = vector.shape_cast %177 : vector<4xf32> to vector<1x1x4xf32>
    %179 = arith.addf %176, %178 : vector<1x1x4xf32>
    %cst_52 = arith.constant dense<0.000000e+00> : vector<4xf32>
    %180 = vector.multi_reduction <add>, %161, %cst_52 [0, 1] : vector<8x8x4xf32> to vector<4xf32>
    %181 = vector.shape_cast %180 : vector<4xf32> to vector<1x1x4xf32>
    %182 = arith.addf %179, %181 : vector<1x1x4xf32>
    %cst_53 = arith.constant dense<0.000000e+00> : vector<4xf32>
    %183 = vector.multi_reduction <add>, %172, %cst_53 [0, 1] : vector<8x8x4xf32> to vector<4xf32>
    %184 = vector.shape_cast %183 : vector<4xf32> to vector<1x1x4xf32>
    %185 = arith.addf %182, %184 : vector<1x1x4xf32>
    %cst_54 = arith.constant 2.560000e+02 : f32
    %186 = vector.broadcast %cst_54 : f32 to vector<1x1x4xf32>
    %187 = arith.divf %185, %186 : vector<1x1x4xf32>
    %188 = vector.broadcast %187 : vector<1x1x4xf32> to vector<8x8x4xf32>
    %189 = arith.subf %130, %188 : vector<8x8x4xf32>
    %190 = arith.mulf %189, %189 : vector<8x8x4xf32>
    %cst_55 = arith.constant dense<0.000000e+00> : vector<4xf32>
    %191 = vector.multi_reduction <add>, %190, %cst_55 [0, 1] : vector<8x8x4xf32> to vector<4xf32>
    %192 = vector.shape_cast %191 : vector<4xf32> to vector<1x1x4xf32>
    %cst_56 = arith.constant 0.000000e+00 : f32
    %193 = vector.broadcast %cst_56 : f32 to vector<1x1x4xf32>
    %194 = arith.addf %193, %192 : vector<1x1x4xf32>
    %195 = vector.broadcast %187 : vector<1x1x4xf32> to vector<8x8x4xf32>
    %196 = arith.subf %141, %195 : vector<8x8x4xf32>
    %197 = arith.mulf %196, %196 : vector<8x8x4xf32>
    %cst_57 = arith.constant dense<0.000000e+00> : vector<4xf32>
    %198 = vector.multi_reduction <add>, %197, %cst_57 [0, 1] : vector<8x8x4xf32> to vector<4xf32>
    %199 = vector.shape_cast %198 : vector<4xf32> to vector<1x1x4xf32>
    %200 = arith.addf %194, %199 : vector<1x1x4xf32>
    %201 = vector.broadcast %187 : vector<1x1x4xf32> to vector<8x8x4xf32>
    %202 = arith.subf %161, %201 : vector<8x8x4xf32>
    %203 = arith.mulf %202, %202 : vector<8x8x4xf32>
    %cst_58 = arith.constant dense<0.000000e+00> : vector<4xf32>
    %204 = vector.multi_reduction <add>, %203, %cst_58 [0, 1] : vector<8x8x4xf32> to vector<4xf32>
    %205 = vector.shape_cast %204 : vector<4xf32> to vector<1x1x4xf32>
    %206 = arith.addf %200, %205 : vector<1x1x4xf32>
    %207 = vector.broadcast %187 : vector<1x1x4xf32> to vector<8x8x4xf32>
    %208 = arith.subf %172, %207 : vector<8x8x4xf32>
    %209 = arith.mulf %208, %208 : vector<8x8x4xf32>
    %cst_59 = arith.constant dense<0.000000e+00> : vector<4xf32>
    %210 = vector.multi_reduction <add>, %209, %cst_59 [0, 1] : vector<8x8x4xf32> to vector<4xf32>
    %211 = vector.shape_cast %210 : vector<4xf32> to vector<1x1x4xf32>
    %212 = arith.addf %206, %211 : vector<1x1x4xf32>
    %cst_60 = arith.constant 2.560000e+02 : f32
    %213 = vector.broadcast %cst_60 : f32 to vector<1x1x4xf32>
    %214 = arith.divf %212, %213 : vector<1x1x4xf32>
    %cst_61 = arith.constant 9.99999974E-6 : f32
    %215 = vector.broadcast %cst_61 : f32 to vector<1x1x4xf32>
    %216 = arith.addf %214, %215 : vector<1x1x4xf32>
    %217 = math.rsqrt %216 : vector<1x1x4xf32>
    %218 = vector.broadcast %187 : vector<1x1x4xf32> to vector<8x8x4xf32>
    %219 = arith.subf %130, %218 : vector<8x8x4xf32>
    %220 = vector.broadcast %217 : vector<1x1x4xf32> to vector<8x8x4xf32>
    %221 = arith.mulf %219, %220 : vector<8x8x4xf32>
    %cst_62 = arith.constant 0.000000e+00 : f32
    %222 = vector.broadcast %cst_62 : f32 to vector<8x8x4xf32>
    %223 = arith.maximumf %221, %222 : vector<8x8x4xf32>
    %c0_63 = arith.constant 0 : index
    %c0_64 = arith.constant 0 : index
    %c0_65 = arith.constant 0 : index
    %c0_66 = arith.constant 0 : index
    %c0_67 = arith.constant 0 : index
    %224 = vector.load %arg3[%c0_63, %c0_64, %c0_65, %c0_66, %c0_67] : memref<1x8x2x8x8xf32, #tpu.memory_space<vmem>>, vector<1x8x1x8x4xf32>
    %225 = vector.shape_cast %224 : vector<1x8x1x8x4xf32> to vector<8x8x4xf32>
    %226 = vector.broadcast %187 : vector<1x1x4xf32> to vector<8x8x4xf32>
    %227 = arith.subf %141, %226 : vector<8x8x4xf32>
    %228 = vector.broadcast %217 : vector<1x1x4xf32> to vector<8x8x4xf32>
    %229 = arith.mulf %227, %228 : vector<8x8x4xf32>
    %cst_68 = arith.constant 0.000000e+00 : f32
    %230 = vector.broadcast %cst_68 : f32 to vector<8x8x4xf32>
    %231 = arith.maximumf %229, %230 : vector<8x8x4xf32>
    %c0_69 = arith.constant 0 : index
    %c0_70 = arith.constant 0 : index
    %c0_71 = arith.constant 0 : index
    %c0_72 = arith.constant 0 : index
    %c4 = arith.constant 4 : index
    %232 = vector.load %arg3[%c0_69, %c0_70, %c0_71, %c0_72, %c4] : memref<1x8x2x8x8xf32, #tpu.memory_space<vmem>>, vector<1x8x1x8x4xf32>
    %233 = vector.shape_cast %232 : vector<1x8x1x8x4xf32> to vector<8x8x4xf32>
    %234 = tpu.concatenate %223, %225, %231, %233 in 2 : vector<8x8x4xf32>, vector<8x8x4xf32>, vector<8x8x4xf32>, vector<8x8x4xf32> -> vector<8x8x16xf32>
    %c0_73 = arith.constant 0 : index
    %c0_74 = arith.constant 0 : index
    %c0_75 = arith.constant 0 : index
    %c0_76 = arith.constant 0 : index
    %c0_77 = arith.constant 0 : index
    %235 = vector.load %arg4[%c0_73, %c0_74, %c0_75, %c0_76, %c0_77] : memref<1x8x2x8x16xf32, #tpu.memory_space<vmem>>, vector<1x8x1x8x16xf32>
    %236 = vector.shape_cast %235 : vector<1x8x1x8x16xf32> to vector<8x8x16xf32>
    %237 = vector.shape_cast %234 : vector<8x8x16xf32> to vector<1x8x1x8x16xf32>
    tpu.vector_store %arg4[%c0_73, %c0_74, %c0_75, %c0_76, %c0_77], %237 {strides = array<i32>} : memref<1x8x2x8x16xf32, #tpu.memory_space<vmem>>, vector<1x8x1x8x16xf32>,
    %238 = vector.broadcast %187 : vector<1x1x4xf32> to vector<8x8x4xf32>
    %239 = arith.subf %161, %238 : vector<8x8x4xf32>
    %240 = vector.broadcast %217 : vector<1x1x4xf32> to vector<8x8x4xf32>
    %241 = arith.mulf %239, %240 : vector<8x8x4xf32>
    %cst_78 = arith.constant 0.000000e+00 : f32
    %242 = vector.broadcast %cst_78 : f32 to vector<8x8x4xf32>
    %243 = arith.maximumf %241, %242 : vector<8x8x4xf32>
    %c0_79 = arith.constant 0 : index
    %c0_80 = arith.constant 0 : index
    %c1_81 = arith.constant 1 : index
    %c0_82 = arith.constant 0 : index
    %c0_83 = arith.constant 0 : index
    %244 = vector.load %arg3[%c0_79, %c0_80, %c1_81, %c0_82, %c0_83] : memref<1x8x2x8x8xf32, #tpu.memory_space<vmem>>, vector<1x8x1x8x4xf32>
    %245 = vector.shape_cast %244 : vector<1x8x1x8x4xf32> to vector<8x8x4xf32>
    %246 = vector.broadcast %187 : vector<1x1x4xf32> to vector<8x8x4xf32>
    %247 = arith.subf %172, %246 : vector<8x8x4xf32>
    %248 = vector.broadcast %217 : vector<1x1x4xf32> to vector<8x8x4xf32>
    %249 = arith.mulf %247, %248 : vector<8x8x4xf32>
    %cst_84 = arith.constant 0.000000e+00 : f32
    %250 = vector.broadcast %cst_84 : f32 to vector<8x8x4xf32>
    %251 = arith.maximumf %249, %250 : vector<8x8x4xf32>
    %c0_85 = arith.constant 0 : index
    %c0_86 = arith.constant 0 : index
    %c1_87 = arith.constant 1 : index
    %c0_88 = arith.constant 0 : index
    %c4_89 = arith.constant 4 : index
    %252 = vector.load %arg3[%c0_85, %c0_86, %c1_87, %c0_88, %c4_89] : memref<1x8x2x8x8xf32, #tpu.memory_space<vmem>>, vector<1x8x1x8x4xf32>
    %253 = vector.shape_cast %252 : vector<1x8x1x8x4xf32> to vector<8x8x4xf32>
    %254 = tpu.concatenate %243, %245, %251, %253 in 2 : vector<8x8x4xf32>, vector<8x8x4xf32>, vector<8x8x4xf32>, vector<8x8x4xf32> -> vector<8x8x16xf32>
    %c0_90 = arith.constant 0 : index
    %c0_91 = arith.constant 0 : index
    %c1_92 = arith.constant 1 : index
    %c0_93 = arith.constant 0 : index
    %c0_94 = arith.constant 0 : index
    %255 = vector.load %arg4[%c0_90, %c0_91, %c1_92, %c0_93, %c0_94] : memref<1x8x2x8x16xf32, #tpu.memory_space<vmem>>, vector<1x8x1x8x16xf32>
    %256 = vector.shape_cast %255 : vector<1x8x1x8x16xf32> to vector<8x8x16xf32>
    %257 = vector.shape_cast %254 : vector<8x8x16xf32> to vector<1x8x1x8x16xf32>
    tpu.vector_store %arg4[%c0_90, %c0_91, %c1_92, %c0_93, %c0_94], %257 {strides = array<i32>} : memref<1x8x2x8x16xf32, #tpu.memory_space<vmem>>, vector<1x8x1x8x16xf32>,
    return
  }
  func.func @transform_0(%arg0: i32) -> (i32, i32, i32, i32) {
    %c0_i32 = arith.constant 0 : i32
    %c0_i32_0 = arith.constant 0 : i32
    %c0_i32_1 = arith.constant 0 : i32
    %c0_i32_2 = arith.constant 0 : i32
    return %arg0, %c0_i32, %c0_i32_0, %c0_i32_1 : i32, i32, i32, i32
  }
  func.func @transform_1(%arg0: i32) -> (i32, i32, i32) {
    %c0_i32 = arith.constant 0 : i32
    %c0_i32_0 = arith.constant 0 : i32
    %c0_i32_1 = arith.constant 0 : i32
    %c0_i32_2 = arith.constant 0 : i32
    return %c0_i32, %c0_i32_0, %c0_i32_1 : i32, i32, i32
  }
  func.func @transform_2(%arg0: i32) -> (i32, i32, i32, i32, i32) {
    %c0_i32 = arith.constant 0 : i32
    %c0_i32_0 = arith.constant 0 : i32
    %c0_i32_1 = arith.constant 0 : i32
    %c0_i32_2 = arith.constant 0 : i32
    %c0_i32_3 = arith.constant 0 : i32
    return %arg0, %c0_i32, %c0_i32_0, %c0_i32_1, %c0_i32_2 : i32, i32, i32, i32, i32
  }
  func.func @transform_3(%arg0: i32) -> (i32, i32, i32, i32, i32) {
    %c0_i32 = arith.constant 0 : i32
    %c0_i32_0 = arith.constant 0 : i32
    %c0_i32_1 = arith.constant 0 : i32
    %c0_i32_2 = arith.constant 0 : i32
    %c0_i32_3 = arith.constant 0 : i32
    return %arg0, %c0_i32, %c0_i32_0, %c0_i32_1, %c0_i32_2 : i32, i32, i32, i32, i32
  }
}

</mosaic_0001>

<bundles_post_ra>
// kernel: unet_up_forward.1
= control target key start
LH: loop header
LB: loop body
LE: loop exit
PB: predicated region body
PF: predicated region fallthrough
CT: control target
= control target key end

     0   :  { %s2320_s12 = smov 0   ;;  %s3568_s0 = inlined_call_operand.vmem [shape: bf16[2,8,8,8], index: 0, kind: input, shape index: {}]   ;;  %s3569_s1 = inlined_call_operand.vmem [shape: bf16[4,32,4], index: 1, kind: input, shape index: {}]   ;;  %s3570_s2 = inlined_call_operand.vmem [shape: f32[2,8,2,8,8], index: 2, kind: input, shape index: {}]   ;;  %s3571_s3 = inlined_call_operand.vmem [shape: f32[2,8,2,8,16], index: 3, kind: output, shape index: {}]  }
   0x1 LB: > { %s2155_s13 = sadd.s32 4294967295, %s2292_s12   ;;  %p2159_p0 = scmp.ge.s32.totalorder %s2292_s12, 1  ;;  %s2292_s12 = sphi %s2320_s12, %s13_s12  }
   0x2   : > { %p147_p1 = scmp.lt.s32.totalorder %s2292_s12, 3 }
   0x4   : > { %p148_p2 = pnand %p2159_p0, %p147_p1 }
   0x6   : > { %151 = sbr.rel (%p148_p2) target bundleno = 713 (0x2c9), region = 32 }
   0xb   : > { %p176_p3 = scmp.lt.s32.totalorder %s2155_s13, 1  ;;  %vm272_vm0 = vcmask 1040384   ;;  %vm273_vm1 = vsmask.f32 256  ;;  %vm284_vm2 = vcmask 1044480   ;;  %v2294_v0 = vmov 0  }
   0xc   : > { %vm285_vm3 = vsmask.f32 4352  ;;  %v203_v1 = vrot.slane %v2294_v0, 7  ;;  %vm2331_vm4 = vmand %vm272_vm0, %vm273_vm1  ;;  %s2295_s18 = smov 24   ;;  %s2296_s19 = smov 16   ;;  %v2263_v3 = vld [vmem:[%s3569_s1 + $0x38] sm:$0xff] }
   0xd   : > { %s3651_s13 = smov (!%p176_p3, %s2155_s13), 1  ;;  %vm2336_vm5 = vmand %vm284_vm2, %vm285_vm3  ;;  %s2297_s20 = smov 8   ;;  %935 = vmatpush.bf16.msra.mxu3 %v2263_v3  ;;  %vm415_vm6 = vcmask 64512   ;;  %vm432_vm7 = vcmask 130048   ;;  %vm449_vm8 = vcmask 195584   ;;  %vm691_vm9 = vcmask 1042432  }
   0xe   : > { %s2253_s14 = sshll.u32 %s3651_s13, 5  ;;  %v275_v4 = vsel %vm2331_vm4, 0, %v203_v1  ;;  %vm692_vm10 = vcmask 1046532   ;;  %vm506_vm12 = vsmask.f32 3328  ;;  %vm649_vm15 = vcmask 261120  }
   0xf   : > { %s2345_s17 = scalar_lea.vmem %s3568_s0, %s2253_s14  ;;  %v2349_v5 = vsel %vm2336_vm5, %v275_v4, 0  ;;  %vm2499_vm11 = vmor %vm691_vm9, %vm692_vm10  ;;  %vm507_vm13 = vsmask.f32 7440  ;;  %s2254_s10 = sshll.u32 %s3651_s13, 7  ;;  %vm1175_vm1 = vcmask 1046528   ;;  %vm1504_vm2 = vcmask 31744  }
  0x10   : > { %v192_v6 = vld [vmem:[%s2345_s17] sm:$0xf]  ;;  %v193_v7 = vld [vmem:[%s2345_s17 + $0x4] sm:$0xf]  ;;  %v194_v8 = vld [vmem:[%s2345_s17 + $0x8] sm:$0xf]  ;;  %s2579_s15 = scalar_lea.vmem %s3570_s2, %s2254_s10 }
  0x11   : > { %v208_v9 = vshrl.u32 %v192_v6, 16  ;;  %v211_v10 = vshll.u32 %v192_v6, 16  ;;  %v215_v11 = vshrl.u32 %v193_v7, 16  ;;  %v218_v12 = vshll.u32 %v193_v7, 16  ;;  %v196_v13 = vld [vmem:[%s2345_s17 + $0x10] sm:$0xf]  ;;  %vm2516_vm14 = vmor %vm506_vm12, %vm507_vm13 }
  0x12   : > { %v222_v14 = vshrl.u32 %v194_v8, 16  ;;  %v225_v15 = vshll.u32 %v194_v8, 16  ;;  %v393_v16 = vshrl.u32 %v2349_v5, 16  ;;  %v396_v17 = vshll.u32 %v2349_v5, 16  ;;  %v195_v25 = vld [vmem:[%s2345_s17 + $0xc] sm:$0xf] }
  0x13   : > { %v210_v18 = vrot.slane %v208_v9, 7  ;;  %v217_v19 = vrot.slane %v215_v11, 7  ;;  %v236_v20 = vshrl.u32 %v196_v13, 16  ;;  %v239_v31 = vshll.u32 %v196_v13, 16  ;;  %v198_v52 = vld [vmem:[%s2345_s17 + $0x18] sm:$0xf] }
  0x14   : > { %v224_v21 = vrot.slane %v222_v14, 7  ;;  %v395_v22 = vrot.slane %v393_v16, 7  ;;  %v229_v35 = vshrl.u32 %v195_v25, 16  ;;  %v232_v47 = vshll.u32 %v195_v25, 16  ;;  %v197_v59 = vld [vmem:[%s2345_s17 + $0x14] sm:$0xf] }
  0x15   : > { %v213_v23 = vor.u32 %v211_v10, %v210_v18  ;;  %v220_v24 = vor.u32 %v218_v12, %v217_v19  ;;  %v238_v30 = vrot.slane %v236_v20, 7  ;;  %v250_v56 = vshrl.u32 %v198_v52, 16  ;;  %v199_v18 = vld [vmem:[%s2345_s17 + $0x1c] sm:$0xf]  ;;  %s2298_s16 = smov 4  }
  0x16   : > { %v227_v26 = vor.u32 %v225_v15, %v224_v21  ;;  %v2358_v27 = vor.u32 %v396_v17, %v395_v22  ;;  %v231_v46 = vrot.slane %v229_v35, 7  ;;  %v253_v61 = vshll.u32 %v198_v52, 16  ;;  %v2256_v52 = vld [vmem:[%s3569_s1] sm:$0xff] }
  0x17   : > { %v276_v28 = vsel %vm2331_vm4, 0, %v213_v23  ;;  %v277_v29 = vsel %vm2331_vm4, 0, %v220_v24  ;;  %v241_v44 = vor.u32 %v239_v31, %v238_v30  ;;  %v252_v60 = vrot.slane %v250_v56, 7 }
  0x18   : > { %v2366_v32 = vsel %vm2336_vm5, %v276_v28, 0  ;;  %v2370_v33 = vsel %vm2336_vm5, %v277_v29, 0  ;;  %v278_v34 = vsel %vm2331_vm4, 0, %v227_v26  ;;  %399 = vrot.lane.b32.xlu2 %v2358_v27, %s2295_s18  ;;  %v234_v53 = vor.u32 %v232_v47, %v231_v46  ;;  %v2258_v46 = vld [vmem:[%s3569_s1 + $0x10] sm:$0xff]  ;;  %v2257_v47 = vld [vmem:[%s3569_s1 + $0x8] sm:$0xff] }
  0x19   : > { %378 = vrot.lane.b32.xlu1 %v2366_v32, %s2296_s19  ;;  %v304_v36 = vshrl.u32 %v2370_v33, 16  ;;  %v307_v37 = vshll.u32 %v2370_v33, 16  ;;  %v2382_v38 = vsel %vm2336_vm5, %v278_v34, 0  ;;  %v297_v39 = vshrl.u32 %v2366_v32, 16  ;;  %668 = vmatpush.bf16.msra.mxu0 %v2257_v47 }
  0x1a   : > { %v300_v40 = vshll.u32 %v2366_v32, 16  ;;  %v311_v42 = vshrl.u32 %v2382_v38, 16  ;;  %v314_v50 = vshll.u32 %v2382_v38, 16  ;;  %v280_v51 = vsel %vm2331_vm4, 0, %v241_v44 }
  0x1b   : > { %v306_v41 = vrot.slane %v304_v36, 7  ;;  %v299_v43 = vrot.slane %v297_v39, 7  ;;  %v2397_v54 = vsel %vm2336_vm5, %v280_v51, 0  ;;  %v279_v58 = vsel %vm2331_vm4, 0, %v234_v53 }
  0x1c   : > { %v313_v49 = vrot.slane %v311_v42, 7  ;;  %v325_v57 = vshrl.u32 %v2397_v54, 16  ;;  %v2406_v62 = vsel %vm2336_vm5, %v279_v58, 0  ;;  %v328_v0 = vshll.u32 %v2397_v54, 16  ;;  %v2259_v42 = vld [vmem:[%s3569_s1 + $0x18] sm:$0xff] }
  0x1d   : > { %v309_v45 = vor.u32 %v307_v37, %v306_v41  ;;  %v302_v48 = vor.u32 %v300_v40, %v299_v43  ;;  %v243_v1 = vshrl.u32 %v197_v59, 16  ;;  %v318_v4 = vshrl.u32 %v2406_v62, 16  ;;  %v2261_v41 = vld [vmem:[%s3569_s1 + $0x28] sm:$0xff]  ;;  %773 = vmatpush.bf16.msra.mxu1 %v2259_v42  ;;  %v2260_v43 = vld [vmem:[%s3569_s1 + $0x20] sm:$0xff]  ;;  %669 = vmatpush.bf16.msra.mxu0 %v2256_v52 }
  0x1e   : > { %v316_v55 = vor.u32 %v314_v50, %v313_v49  ;;  %v327_v63 = vrot.slane %v325_v57, 7  ;;  %v255_v6 = vor.u32 %v253_v61, %v252_v60  ;;  %v246_v9 = vshll.u32 %v197_v59, 16  ;;  %868 = vmatpush.bf16.msra.mxu2 %v2261_v41  ;;  %v1787_v41 = vld [vmem:[%s2579_s15 + $0x60] sm:$0xff] }
  0x1f   : > { %354 = vrot.lane.b32.xlu0 %v309_v45, %s2297_s20  ;;  %v245_v8 = vrot.slane %v243_v1, 7  ;;  %v320_v10 = vrot.slane %v318_v4, 7  ;;  %v321_v11 = vshll.u32 %v2406_v62, 16  ;;  %v257_v22 = vshrl.u32 %v199_v18, 16 }
  0x20   : > { %401 = vrot.lane.b32.xlu2 %v302_v48, %s2295_s18  ;;  %v330_v7 = vor.u32 %v328_v0, %v327_v63  ;;  %v282_v12 = vsel %vm2331_vm4, 0, %v255_v6  ;;  %v260_v26 = vshll.u32 %v199_v18, 16 }
  0x21   : > { %380 = vrot.lane.b32.xlu1 %v2370_v33, %s2296_s19  ;;  %v248_v13 = vor.u32 %v246_v9, %v245_v8  ;;  %v2422_v14 = vsel %vm2336_vm5, %v282_v12, 0  ;;  %v323_v15 = vor.u32 %v321_v11, %v320_v10  ;;  %v259_v25 = vrot.slane %v257_v22, 7  ;;  %774 = vmatpush.bf16.msra.mxu1 %v2258_v46 }
  0x22   : > { %v339_v16 = vshrl.u32 %v2422_v14, 16  ;;  %v342_v21 = vshll.u32 %v2422_v14, 16  ;;  %869 = vmatpush.bf16.msra.mxu2 %v2260_v43 }
  0x23   : > { %v281_v17 = vsel %vm2331_vm4, 0, %v248_v13  ;;  %v262_v30 = vor.u32 %v260_v26, %v259_v25 }
  0x24   : > { %v2431_v19 = vsel %vm2336_vm5, %v281_v17, 0  ;;  %v341_v20 = vrot.slane %v339_v16, 7 }
  0x25   : > { %v332_v23 = vshrl.u32 %v2431_v19, 16  ;;  %v335_v29 = vshll.u32 %v2431_v19, 16  ;;  %v283_v34 = vsel %vm2331_vm4, 0, %v262_v30 }
  0x26   : > { %v344_v24 = vor.u32 %v342_v21, %v341_v20  ;;  %v2448_v35 = vsel %vm2336_vm5, %v283_v34, 0 }
  0x27   : > { %356 = vrot.lane.b32.xlu0 %v316_v55, %s2297_s20  ;;  %v334_v28 = vrot.slane %v332_v23, 7  ;;  %v346_v36 = vshrl.u32 %v2448_v35, 16  ;;  %v349_v39 = vshll.u32 %v2448_v35, 16 }
  0x28   : > { %403 = vrot.lane.b32.xlu2 %v309_v45, %s2295_s18 }
  0x29   : > { %376 = vrot.lane.b32.xlu1 %v2349_v5, %s2296_s19  ;;  %v337_v31 = vor.u32 %v335_v29, %v334_v28  ;;  %v348_v37 = vrot.slane %v346_v36, 7 }
  0x2b   : > { %v351_v2 = vor.u32 %v349_v39, %v348_v37 }
  0x2f   : > { %352 = vrot.lane.b32.xlu0 %v302_v48, %s2297_s20 }
  0x30   : > { %382 = vrot.lane.b32.xlu2 %v2382_v38, %s2296_s19 }
  0x31   : > { %360 = vrot.lane.b32.xlu1 %v330_v7, %s2297_s20 }
  0x37   : > { %358 = vrot.lane.b32.xlu0 %v323_v15, %s2297_s20 }
  0x38   : > { %407 = vrot.lane.b32.xlu2 %v323_v15, %s2295_s18 }
  0x39   : > { %405 = vrot.lane.b32.xlu1 %v316_v55, %s2295_s18 }
  0x3f   : > { %384 = vrot.lane.b32.xlu0 %v2406_v62, %s2296_s19 }
  0x40   : > { %386 = vrot.lane.b32.xlu2 %v2397_v54, %s2296_s19 }
  0x41   : > { %364 = vrot.lane.b32.xlu1 %v344_v24, %s2297_s20 }
  0x47   : > { %362 = vrot.lane.b32.xlu0 %v337_v31, %s2297_s20 }
  0x48   : > { %411 = vrot.lane.b32.xlu2 %v337_v31, %s2295_s18 }
  0x49   : > { %409 = vrot.lane.b32.xlu1 %v330_v7, %s2295_s18 }
  0x4f   : > { %388 = vrot.lane.b32.xlu0 %v2431_v19, %s2296_s19 }
  0x50   : > { %390 = vrot.lane.b32.xlu2 %v2422_v14, %s2296_s19 }
  0x51   : > { %796 = vrot.lane.b32.xlu1 %v2358_v27, %s2297_s20  ;;  %v2262_v27 = vld [vmem:[%s3569_s1 + $0x30] sm:$0xff] }
  0x52   : > { %936 = vmatpush.bf16.msra.mxu3 %v2262_v27 }
  0x57   : > { %366 = vrot.lane.b32.xlu0 %v351_v2, %s2297_s20 }
  0x58   : > { %801 = vrot.lane.b32.xlu2 %v351_v2, %s2295_s18 }
  0x59   : > { %413 = vrot.lane.b32.xlu1 %v344_v24, %s2295_s18 }
  0x5f   : > { %799 = vrot.lane.b32.xlu0 %v2448_v35, %s2296_s19  ;;  %s3453_s19 = scalar_lea.vmem %s3571_s3, %s2254_s10 }
  0x72   : > { %v2468_v40 = vpop.permute.xlu2 %399 }
  0x7a   : > { %v402_v45 = vpop.permute.xlu2 %401 }
  0x82   : > { %v404_v57 = vpop.permute.xlu2 %403 }
  0x8a   : > { %v383_v13 = vpop.permute.xlu2 %382 }
  0x8b   : > { %v379_v44 = vpop.permute.xlu1 %378 }
  0x91   : > { %v355_v48 = vpop.permute.xlu0 %354 }
  0x92   : > { %v419_v49 = vsel %vm415_vm6, %v2370_v33, %v355_v48  ;;  %v408_v48 = vpop.permute.xlu2 %407 }
  0x93   : > { %v381_v50 = vpop.permute.xlu1 %380  ;;  %v436_v51 = vsel %vm432_vm7, %v419_v49, %v379_v44 }
  0x94   : > { %v453_v53 = vsel %vm449_vm8, %v436_v51, %v402_v45 }
  0x95   : > { %v476_v55 = vunpack.c.l.b16 %v453_v53  ;;  %v477_v56 = vunpack.c.h.b16 %v453_v53 }
  0x97   : > { %v492_v58 = vpack.c.b16 %v476_v55, %v476_v55  ;;  %v493_v59 = vpack.c.b16 %v477_v56, %v477_v56 }
  0x99   : > { %v524_v60 = vshrl.u32 %v492_v58, 16  ;;  %v527_v61 = vshll.u32 %v492_v58, 16  ;;  %v357_v63 = vpop.permute.xlu0 %356  ;;  %v2179_v0 = vrot.slane %v492_v58, 9  ;;  %v700_v8 = vrot.slane %v493_v59, 5 }
  0x9a   : > { %v421_v33 = vsel %vm415_vm6, %v2382_v38, %v357_v63  ;;  %v533_v23 = vshll.u32 %v493_v59, 16 }
  0x9b   : > { %v377_v1 = vpop.permute.xlu1 %376  ;;  %v438_v4 = vsel %vm432_vm7, %v421_v33, %v381_v50  ;;  %v526_v6 = vrot.slane %v524_v60, 4  ;;  %v529_v7 = vrot.slane %v527_v61, 5  ;;  %v701_v17 = vsel %vm2499_vm11, %v2179_v0, %v700_v8 }
  0x9c   : > { %v455_v9 = vsel %vm449_vm8, %v438_v4, %v404_v57  ;;  %v732_v31 = vunpack.c.l.b16 %v701_v17  ;;  %v535_v42 = vrot.slane %v533_v23, 5 }
  0x9d   : > { %v478_v10 = vunpack.c.l.b16 %v455_v9  ;;  %v479_v11 = vunpack.c.h.b16 %v455_v9  ;;  %v530_v16 = vor.u32 %v529_v7, %v526_v6 }
  0x9f   : > { %v494_v15 = vpack.c.b16 %v478_v10, %v478_v10  ;;  %v495_v38 = vpack.c.b16 %v479_v11, %v479_v11  ;;  %v531_v39 = vrot.slane %v530_v16, 4 }
  0xa1   : > { %v538_v18 = vshrl.u32 %v494_v15, 16  ;;  %v541_v20 = vshll.u32 %v494_v15, 16  ;;  %v2180_v21 = vrot.slane %v494_v15, 9  ;;  %v353_v22 = vpop.permute.xlu0 %352  ;;  %v704_v24 = vrot.slane %v495_v38, 5 }
  0xa2   : > { %v417_v25 = vsel %vm415_vm6, %v2366_v32, %v353_v22  ;;  %v547_v34 = vshll.u32 %v495_v38, 16  ;;  %v536_v47 = vsel %vm2516_vm14, %v531_v39, %v535_v42  ;;  %v387_v22 = vpop.permute.xlu2 %386 }
  0xa3   : > { %v540_v26 = vrot.slane %v538_v18, 4  ;;  %v543_v28 = vrot.slane %v541_v20, 5  ;;  %v434_v29 = vsel %vm432_vm7, %v417_v25, %v377_v1  ;;  %v361_v30 = vpop.permute.xlu1 %360  ;;  %v2512_v37 = vsel %vm2499_vm11, %v2180_v21, %v704_v24 }
  0xa4   : > { %v451_v36 = vsel %vm449_vm8, %v434_v29, %v2468_v40  ;;  %v733_v32 = vunpack.c.l.b16 %v2512_v37  ;;  %v549_v46 = vrot.slane %v547_v34, 5  ;;  %v626_v61 = vunpack.c.l.b16 %v536_v47 }
  0xa5   : > { %v544_v2 = vor.u32 %v543_v28, %v540_v26  ;;  %v474_v3 = vunpack.c.l.b16 %v451_v36  ;;  %v475_v27 = vunpack.c.h.b16 %v451_v36  ;;  %v425_v38 = vsel %vm415_vm6, %v2397_v54, %v361_v30 }
  0xa6   : > { %v901_v40 = vpack.c.b16 %v733_v32, %v732_v31 }
  0xa7   : > { %v490_v43 = vpack.c.b16 %v474_v3, %v474_v3  ;;  %v491_v44 = vpack.c.b16 %v475_v27, %v475_v27  ;;  %v545_v45 = vrot.slane %v544_v2, 4 }
  0xa8   : > { %2231 = vmatmul.msk.bf16.vlgmr.msra.gmra.mxu3 %vm649_vm15, %v901_v40 }
  0xa9   : > { %v510_v49 = vshrl.u32 %v490_v43, 16  ;;  %v513_v50 = vshll.u32 %v490_v43, 16  ;;  %v696_v51 = vrot.slane %v491_v44, 5  ;;  %v359_v52 = vpop.permute.xlu0 %358  ;;  %v550_v55 = vsel %vm2516_vm14, %v545_v45, %v549_v46 }
  0xaa   : > { %v423_v53 = vsel %vm415_vm6, %v2406_v62, %v359_v52  ;;  %v2178_v56 = vrot.slane %v490_v43, 9  ;;  %v519_v63 = vshll.u32 %v491_v44, 16  ;;  %v2531_v0 = vunpack.c.l.b16 %v550_v55 }
  0xab   : > { %v512_v57 = vrot.slane %v510_v49, 4  ;;  %v515_v58 = vrot.slane %v513_v50, 5  ;;  %v440_v59 = vsel %vm432_vm7, %v423_v53, %v383_v13  ;;  %v406_v60 = vpop.permute.xlu1 %405 }
  0xac   : > { %v457_v33 = vsel %vm449_vm8, %v440_v59, %v406_v60  ;;  %v697_v1 = vsel %vm2499_vm11, %v2178_v56, %v696_v51  ;;  %v834_v8 = vpack.c.b16 %v2531_v0, %v626_v61  ;;  %v521_v13 = vrot.slane %v519_v63, 5  ;;  %v412_v59 = vpop.permute.xlu2 %411 }
  0xad   : > { %v480_v4 = vunpack.c.l.b16 %v457_v33  ;;  %v481_v62 = vunpack.c.h.b16 %v457_v33  ;;  %v731_v6 = vunpack.c.l.b16 %v697_v1  ;;  %v516_v7 = vor.u32 %v515_v58, %v512_v57 }
  0xae   : > { %2214 = vmatmul.msk.bf16.vlgmr.msra.gmra.mxu2 %vm649_vm15, %v834_v8 }
  0xaf   : > { %v496_v9 = vpack.c.b16 %v480_v4, %v480_v4  ;;  %v739_v10 = vpack.c.b16 %v732_v31, %v731_v6  ;;  %v517_v11 = vrot.slane %v516_v7, 4  ;;  %v497_v15 = vpack.c.b16 %v481_v62, %v481_v62 }
  0xb1   : > { %v552_v16 = vshrl.u32 %v496_v9, 16  ;;  %v555_v17 = vshll.u32 %v496_v9, 16  ;;  %2198 = vmatmul.msk.bf16.vlgmr.msra.gmra.mxu1 %vm649_vm15, %v739_v10  ;;  %v385_v18 = vpop.permute.xlu0 %384  ;;  %v522_v21 = vsel %vm2516_vm14, %v517_v11, %v521_v13  ;;  %v2181_v25 = vrot.slane %v496_v9, 9 }
  0xb2   : > { %v442_v20 = vsel %vm432_vm7, %v425_v38, %v385_v18  ;;  %v708_v29 = vrot.slane %v497_v15, 5  ;;  %v625_v30 = vunpack.c.l.b16 %v522_v21  ;;  %v561_v44 = vshll.u32 %v497_v15, 16 }
  0xb3   : > { %v554_v23 = vrot.slane %v552_v16, 4  ;;  %v557_v24 = vrot.slane %v555_v17, 5  ;;  %v459_v26 = vsel %vm449_vm8, %v442_v20, %v408_v48  ;;  %v365_v28 = vpop.permute.xlu1 %364 }
  0xb4   : > { %v482_v31 = vunpack.c.l.b16 %v459_v26  ;;  %v483_v54 = vunpack.c.h.b16 %v459_v26  ;;  %v633_v39 = vpack.c.b16 %v626_v61, %v625_v30  ;;  %v709_v43 = vsel %vm2499_vm11, %v2181_v25, %v708_v29 }
  0xb5   : > { %v558_v2 = vor.u32 %v557_v24, %v554_v23  ;;  %v734_v53 = vunpack.c.l.b16 %v709_v43  ;;  %v563_v60 = vrot.slane %v561_v44, 5  ;;  %v429_v9 = vsel %vm415_vm6, %v2422_v14, %v365_v28  ;;  %v391_v28 = vpop.permute.xlu2 %390 }
  0xb6   : > { %v498_v34 = vpack.c.b16 %v482_v31, %v482_v31  ;;  %v499_v36 = vpack.c.b16 %v483_v54, %v483_v54  ;;  %2174 = vmatmul.msk.bf16.vlgmr.msra.gmra.mxu0 %vm649_vm15, %v633_v39 }
  0xb7   : > { %v559_v55 = vrot.slane %v558_v2, 4  ;;  %v740_v62 = vpack.c.b16 %v734_v53, %v733_v32 }
  0xb8   : > { %v566_v3 = vshrl.u32 %v498_v34, 16  ;;  %v569_v27 = vshll.u32 %v498_v34, 16  ;;  %v2182_v42 = vrot.slane %v498_v34, 9  ;;  %v712_v40 = vrot.slane %v499_v36, 5 }
  0xb9   : > { %v363_v45 = vpop.permute.xlu0 %362  ;;  %v575_v48 = vshll.u32 %v499_v36, 16  ;;  %v564_v6 = vsel %vm2516_vm14, %v559_v55, %v563_v60  ;;  %v2587_v36 = vld [vmem:[%s2579_s15 + $0x10] sm:$0xff]  ;;  %v2606_v60 = vld [vmem:[%s2579_s15 + $0x40] sm:$0xff] }
  0xba   : > { %v568_v46 = vrot.slane %v566_v3, 4  ;;  %v571_v47 = vrot.slane %v569_v27, 5  ;;  %v427_v49 = vsel %vm415_vm6, %v2431_v19, %v363_v45  ;;  %v2552_v52 = vsel %vm2499_vm11, %v2182_v42, %v712_v40  ;;  %1815 = vrot.lane.b32.xlu1 %v2587_v36, %s2298_s16 }
  0xbb   : > { %v444_v50 = vsel %vm432_vm7, %v427_v49, %v387_v22  ;;  %v410_v51 = vpop.permute.xlu1 %409  ;;  %v735_v58 = vunpack.c.l.b16 %v2552_v52  ;;  %v577_v19 = vrot.slane %v575_v48, 5  ;;  %v628_v32 = vunpack.c.l.b16 %v564_v6 }
  0xbc   : > { %v572_v56 = vor.u32 %v571_v47, %v568_v46  ;;  %v461_v57 = vsel %vm449_vm8, %v444_v50, %v410_v51 }
  0xbd   : > { %v484_v61 = vunpack.c.l.b16 %v461_v57  ;;  %v485_v63 = vunpack.c.h.b16 %v461_v57  ;;  %v902_v33 = vpack.c.b16 %v735_v58, %v734_v53  ;;  %v634_v26 = vpack.c.b16 %v628_v32, %v2531_v0  ;;  %v2592_v0 = vld [vmem:[%s2579_s15] sm:$0xff] }
  0xbe   : > { %v573_v1 = vrot.slane %v572_v56, 4  ;;  %1813 = vrot.lane.b32.xlu0 %v2592_v0, %s2298_s16 }
  0xbf   : > { %v500_v4 = vpack.c.b16 %v484_v61, %v484_v61  ;;  %v501_v7 = vpack.c.b16 %v485_v63, %v485_v63  ;;  %2232 = vmatmul.msk.bf16.gmra.mxu3 %vm649_vm15, %v902_v33 }
  0xc0   : > { %v578_v8 = vsel %vm2516_vm14, %v573_v1, %v577_v19  ;;  %v802_v1 = vpop.permute.xlu2 %801 }
  0xc1   : > { %v580_v10 = vshrl.u32 %v500_v4, 16  ;;  %v583_v11 = vshll.u32 %v500_v4, 16  ;;  %2199 = vmatmul.msk.bf16.gmra.mxu1 %vm649_vm15, %v740_v62  ;;  %v389_v13 = vpop.permute.xlu0 %388  ;;  %v2570_v15 = vunpack.c.l.b16 %v578_v8  ;;  %v2183_v17 = vrot.slane %v500_v4, 9 }
  0xc2   : > { %v446_v37 = vsel %vm432_vm7, %v429_v9, %v389_v13  ;;  %v716_v21 = vrot.slane %v501_v7, 5  ;;  %v589_v39 = vshll.u32 %v501_v7, 16  ;;  %1821 = vrot.lane.b32.xlu1 %v2606_v60, %s2298_s16 }
  0xc3   : > { %v582_v38 = vrot.slane %v580_v10, 4  ;;  %v585_v16 = vrot.slane %v583_v11, 5  ;;  %v463_v18 = vsel %vm449_vm8, %v446_v37, %v412_v59  ;;  %v797_v20 = vpop.permute.xlu1 %796  ;;  %v835_v23 = vpack.c.b16 %v2570_v15, %v628_v32 }
  0xc4   : > { %v486_v14 = vunpack.c.l.b16 %v463_v18  ;;  %v487_v22 = vunpack.c.h.b16 %v463_v18  ;;  %v717_v34 = vsel %vm2499_vm11, %v2183_v17, %v716_v21  ;;  %v591_v53 = vrot.slane %v589_v39, 5 }
  0xc5   : > { %2215 = vmatmul.msk.bf16.gmra.mxu2 %vm649_vm15, %v835_v23  ;;  %v586_v29 = vor.u32 %v585_v16, %v582_v38  ;;  %v736_v47 = vunpack.c.l.b16 %v717_v34  ;;  %v804_v62 = vsel %vm415_vm6, %v2349_v5, %v797_v20 }
  0xc6   : > { %v502_v24 = vpack.c.b16 %v486_v14, %v486_v14  ;;  %v503_v25 = vpack.c.b16 %v487_v22, %v487_v22  ;;  %2175 = vmatmul.msk.bf16.gmra.mxu0 %vm649_vm15, %v634_v26 }
  0xc7   : > { %v587_v48 = vrot.slane %v586_v29, 4  ;;  %v741_v63 = vpack.c.b16 %v736_v47, %v735_v58 }
  0xc8   : > { %v594_v31 = vshrl.u32 %v502_v24, 16  ;;  %v597_v54 = vshll.u32 %v502_v24, 16  ;;  %v2184_v30 = vrot.slane %v502_v24, 9  ;;  %v720_v2 = vrot.slane %v503_v25, 5 }
  0xc9   : > { %v367_v3 = vpop.permute.xlu0 %366  ;;  %v603_v43 = vshll.u32 %v503_v25, 16  ;;  %v592_v19 = vsel %vm2516_vm14, %v587_v48, %v591_v53  ;;  %v2638_v48 = vld [vmem:[%s2579_s15 + $0x70] sm:$0xff] }
  0xca   : > { %v596_v27 = vrot.slane %v594_v31, 4  ;;  %v599_v42 = vrot.slane %v597_v54, 5  ;;  %v431_v44 = vsel %vm415_vm6, %v2448_v35, %v367_v3  ;;  %v2601_v46 = vsel %vm2499_vm11, %v2184_v30, %v720_v2  ;;  %1827 = vrot.lane.b32.xlu1 %v2638_v48, %s2298_s16 }
  0xcb   : > { %v448_v40 = vsel %vm432_vm7, %v431_v44, %v391_v28  ;;  %v414_v45 = vpop.permute.xlu1 %413  ;;  %v737_v51 = vunpack.c.l.b16 %v2601_v46  ;;  %v605_v56 = vrot.slane %v603_v43, 5  ;;  %v630_v58 = vunpack.c.l.b16 %v592_v19 }
  0xcc   : > { %v600_v49 = vor.u32 %v599_v42, %v596_v27  ;;  %v465_v50 = vsel %vm449_vm8, %v448_v40, %v414_v45 }
  0xcd   : > { %v488_v35 = vunpack.c.l.b16 %v465_v50  ;;  %v489_v55 = vunpack.c.h.b16 %v465_v50  ;;  %v903_v57 = vpack.c.b16 %v737_v51, %v736_v47  ;;  %v635_v21 = vpack.c.b16 %v630_v58, %v2570_v15  ;;  %v1783_v50 = vld [vmem:[%s2579_s15 + $0x20] sm:$0xff] }
  0xce   : > { %v601_v59 = vrot.slane %v600_v49, 4  ;;  %v1784_v49 = vld [vmem:[%s2579_s15 + $0x30] sm:$0xff]  ;;  %1817 = vrot.lane.b32.xlu2 %v1783_v50, %s2298_s16 }
  0xcf   : > { %v504_v61 = vpack.c.b16 %v488_v35, %v488_v35  ;;  %v505_v33 = vpack.c.b16 %v489_v55, %v489_v55  ;;  %2233 = vmatmul.msk.bf16.gmra.mxu3 %vm649_vm15, %v903_v57  ;;  %1819 = vrot.lane.b32.xlu0 %v1784_v49, %s2298_s16  ;;  %v1786_v57 = vld [vmem:[%s2579_s15 + $0x50] sm:$0xff] }
  0xd0   : > { %v606_v4 = vsel %vm2516_vm14, %v601_v59, %v605_v56 }
  0xd1   : > { %v608_v6 = vshrl.u32 %v504_v61, 16  ;;  %v611_v7 = vshll.u32 %v504_v61, 16  ;;  %2200 = vmatmul.msk.bf16.gmra.mxu1 %vm649_vm15, %v741_v63  ;;  %v800_v8 = vpop.permute.xlu0 %799  ;;  %v631_v9 = vunpack.c.l.b16 %v606_v4  ;;  %v2185_v13 = vrot.slane %v504_v61, 9 }
  0xd2   : > { %v806_v52 = vsel %vm432_vm7, %v804_v62, %v800_v8  ;;  %v724_v32 = vrot.slane %v505_v33, 5  ;;  %v617_v14 = vshll.u32 %v505_v33, 16  ;;  %1869 = vrot.lane.b32.xlu1 %v2592_v0, %s2297_s20 }
  0xd3   : > { %v610_v10 = vrot.slane %v608_v6, 4  ;;  %v613_v11 = vrot.slane %v611_v7, 5  ;;  %v808_v37 = vsel %vm449_vm8, %v806_v52, %v802_v1  ;;  %v836_v16 = vpack.c.b16 %v631_v9, %v630_v58 }
  0xd4   : > { %v810_v38 = vunpack.c.l.b16 %v808_v37  ;;  %v811_v5 = vunpack.c.h.b16 %v808_v37  ;;  %v725_v25 = vsel %vm2499_vm11, %v2185_v13, %v724_v32  ;;  %v619_v39 = vrot.slane %v617_v14, 5 }
  0xd5   : > { %v614_v17 = vor.u32 %v613_v11, %v610_v10  ;;  %2216 = vmatmul.msk.bf16.gmra.mxu2 %vm649_vm15, %v836_v16  ;;  %v738_v30 = vunpack.c.l.b16 %v725_v25  ;;  %vm1909_vm8 = vcmask 97280  }
  0xd6   : > { %v812_v18 = vpack.c.b16 %v810_v38, %v810_v38  ;;  %v813_v20 = vpack.c.b16 %v811_v5, %v811_v5  ;;  %2176 = vmatmul.msk.bf16.gmra.mxu0 %vm649_vm15, %v635_v21  ;;  %1823 = vrot.lane.b32.xlu2 %v1786_v57, %s2298_s16 }
  0xd7   : > { %v615_v54 = vrot.slane %v614_v17, 4  ;;  %v742_v44 = vpack.c.b16 %v738_v30, %v737_v51  ;;  %1825 = vrot.lane.b32.xlu0 %v1787_v41, %s2298_s16 }
  0xd8   : > { %v815_v22 = vshrl.u32 %v812_v18, 16  ;;  %v818_v23 = vshll.u32 %v812_v18, 16  ;;  %v2218_v24 = vrot.slane %v812_v18, 9  ;;  %v893_v26 = vrot.slane %v813_v20, 5 }
  0xd9   : > { %v824_v31 = vshll.u32 %v813_v20, 16  ;;  %v620_v42 = vsel %vm2516_vm14, %v615_v54, %v619_v39 }
  0xda   : > { %v817_v28 = vrot.slane %v815_v22, 4  ;;  %v820_v29 = vrot.slane %v818_v23, 5  ;;  %v894_v34 = vsel %vm2499_vm11, %v2218_v24, %v893_v26  ;;  %v632_v12 = vunpack.c.l.b16 %v620_v42  ;;  %1875 = vrot.lane.b32.xlu1 %v1784_v49, %s2297_s20 }
  0xdb   : > { %v900_v2 = vunpack.c.l.b16 %v894_v34  ;;  %v826_v3 = vrot.slane %v824_v31, 5  ;;  %v2668_v34 = vld [vmem:[%s2579_s15 + $0x8] sm:$0xff] }
  0xdc   : > { %v821_v15 = vor.u32 %v820_v29, %v817_v28  ;;  %v636_v47 = vpack.c.b16 %v632_v12, %v631_v9 }
  0xdd   : > { %v904_v27 = vpack.c.b16 %v900_v2, %v738_v30  ;;  %v2236_v30 = vld [vmem:[%s2579_s15 + $0x18] sm:$0xff] }
  0xde   : > { %v822_v43 = vrot.slane %v821_v15, 4  ;;  %1871 = vrot.lane.b32.xlu2 %v2587_v36, %s2297_s20 }
  0xdf   : > { %2234 = vmatmul.msk.bf16.gmra.mxu3 %vm649_vm15, %v904_v27  ;;  %1873 = vrot.lane.b32.xlu0 %v1783_v50, %s2297_s20 }
  0xe0   : > { %v827_v40 = vsel %vm2516_vm14, %v822_v43, %v826_v3 }
  0xe1   : > { %2201 = vmatmul.msk.bf16.gmra.mxu1 %vm649_vm15, %v742_v44  ;;  %v833_v45 = vunpack.c.l.b16 %v827_v40 }
  0xe2   : > { %1881 = vrot.lane.b32.xlu1 %v1787_v41, %s2297_s20 }
  0xe3   : > { %v837_v46 = vpack.c.b16 %v833_v45, %v632_v12 }
  0xe5   : > { %2217 = vmatmul.msk.bf16.gmra.mxu2 %vm649_vm15, %v837_v46 }
  0xe6   : > { %2177 = vmatmul.msk.bf16.gmra.mxu0 %vm649_vm15, %v636_v47  ;;  %1877 = vrot.lane.b32.xlu2 %v2606_v60, %s2297_s20 }
  0xe7   : > { %1879 = vrot.lane.b32.xlu0 %v1786_v57, %s2297_s20 }
  0xea   : > { %1977 = vrot.lane.b32.xlu1 %v2236_v30, %s2298_s16 }
  0xee   : > { %1883 = vrot.lane.b32.xlu2 %v2638_v48, %s2297_s20 }
  0xef   : > { %1975 = vrot.lane.b32.xlu0 %v2668_v34, %s2298_s16 }
 0x12b   : > { %v938_v51 = vpop.f32.mrf.mxu3 }
 0x12c   : > { %v1038_v55 = vmul.f32 0.125, %v938_v51  ;;  %v1061_v61 = vmul.f32 0.375, %v938_v51 }
 0x12e   : > { %v776_v53 = vpop.f32.mrf.mxu1 }
 0x12f   : > { %v1045_v35 = vmul.f32 0.375, %v776_v53  ;;  %v1092_v56 = vmul.f32 0.125, %v776_v53 }
 0x131   : > { %v1053_v59 = vadd.f32 %v1045_v35, %v1038_v55  ;;  %v871_v0 = vpop.f32.mrf.mxu2  ;;  %v1093_v19 = vadd.f32 %v1092_v56, %v1061_v61 }
 0x132   : > { %v958_v8 = vmul.f32 0.125, %v871_v0  ;;  %v981_v32 = vmul.f32 0.375, %v871_v0 }
 0x133   : > { %v671_v63 = vpop.f32.mrf.mxu0  ;;  %v940_v33 = vpop.f32.mrf.mxu3  ;;  %v1069_v6 = vadd.f32 %v1061_v61, %v1053_v59 }
 0x134   : > { %v965_v4 = vmul.f32 0.375, %v671_v63  ;;  %v2656_v52 = vmul.f32 0.125, %v940_v33  ;;  %v1012_v10 = vmul.f32 0.125, %v671_v63  ;;  %v1062_v5 = vmul.f32 0.375, %v940_v33 }
 0x136   : > { %v778_v1 = vpop.f32.mrf.mxu1  ;;  %v973_v11 = vadd.f32 %v965_v4, %v958_v8  ;;  %v1013_v20 = vadd.f32 %v1012_v10, %v981_v32 }
 0x137   : > { %v1046_v62 = vmul.f32 0.375, %v778_v1  ;;  %v1077_v7 = vmul.f32 0.125, %v778_v1 }
 0x138   : > { %v989_v26 = vadd.f32 %v981_v32, %v973_v11 }
 0x139   : > { %v1084_v58 = vadd.f32 %v1077_v7, %v1069_v6  ;;  %v1101_v9 = vadd.f32 %v1093_v19, %v1046_v62  ;;  %v1054_v38 = vadd.f32 %v1046_v62, %v1038_v55  ;;  %v873_v17 = vpop.f32.mrf.mxu2  ;;  %v1094_v24 = vadd.f32 %v1077_v7, %v1062_v5 }
 0x13a   : > { %v2664_v29 = vmul.f32 0.125, %v873_v17  ;;  %v982_v44 = vmul.f32 0.375, %v873_v17 }
 0x13b   : > { %v1110_v13 = vadd.f32 %v1101_v9, %v2656_v52  ;;  %v1126_v37 = vrot.slane %v1084_v58, 7  ;;  %v1184_v16 = vrot.slane %v1084_v58, 1  ;;  %v673_v18 = vpop.f32.mrf.mxu0  ;;  %v2662_v36 = vmul.f32 0.375, %v1084_v58 }
 0x13c   : > { %v966_v22 = vmul.f32 0.375, %v673_v18  ;;  %v997_v28 = vmul.f32 0.125, %v673_v18  ;;  %v1070_v54 = vadd.f32 %v1062_v5, %v1054_v38 }
 0x13d   : > { %v1320_v21 = vrot.slane %v1110_v13, 7  ;;  %v1376_v14 = vrot.slane %v1110_v13, 1  ;;  %v1143_v25 = vsel %vm272_vm0, %v1084_v58, %v1126_v37  ;;  %v1200_v39 = vsel %vm1175_vm1, %v1184_v16, %v1126_v37 }
 0x13e   : > { %v781_v23 = vpop.f32.mrf.mxu1  ;;  %v1021_v31 = vadd.f32 %v1013_v20, %v966_v22  ;;  %v1004_v15 = vadd.f32 %v997_v28, %v989_v26  ;;  %v1208_v27 = vmul.f32 0.125, %v1143_v25  ;;  %v1296_v49 = vmul.f32 0.125, %v1200_v39 }
 0x13f   : > { %v1047_v2 = vmul.f32 0.375, %v781_v23  ;;  %v1078_v3 = vmul.f32 0.125, %v781_v23  ;;  %v1336_v42 = vsel %vm272_vm0, %v1110_v13, %v1320_v21  ;;  %v1392_v43 = vsel %vm1175_vm1, %v1376_v14, %v1320_v21 }
 0x140   : > { %v2677_v40 = vadd.f32 %v1021_v31, %v2664_v29  ;;  %v1159_v12 = vrot.slane %v1004_v15, 1  ;;  %v1264_v45 = vmul.f32 0.125, %v1004_v15  ;;  %v2681_v41 = vmul.f32 0.375, %v1110_v13  ;;  %v2721_v31 = vld [vmem:[%s2579_s15 + $0x38] sm:$0xff] }
 0x141   : > { %v1085_v46 = vadd.f32 %v1078_v3, %v1070_v54  ;;  %v974_v50 = vadd.f32 %v966_v22, %v958_v8  ;;  %v1102_v55 = vadd.f32 %v1094_v24, %v1047_v2  ;;  %v2689_v59 = vmul.f32 0.125, %v1336_v42  ;;  %1981 = vrot.lane.b32.xlu0 %v2721_v31, %s2298_s16 }
 0x142   : > { %v943_v47 = vpop.f32.mrf.mxu3  ;;  %3597 = vst [vmem:[#allocation2_spill] sm:$0xff] %v2681_v41  ;;  %v2686_v53 = vsel %vm1175_vm1, %v1159_v12, %v1004_v15  ;;  %v1272_v35 = vadd.f32 %v1264_v45, %v2662_v36  ;;  %v2691_v0 = vmul.f32 0.125, %v1392_v43  ;;  %v1216_v63 = vmul.f32 0.375, %v1004_v15 }
 0x143   : > { %v2683_v51 = vmul.f32 0.125, %v943_v47  ;;  %v1127_v56 = vrot.slane %v1085_v46, 7  ;;  %v676_v57 = vpop.f32.mrf.mxu0  ;;  %v1280_v60 = vmul.f32 0.375, %v2686_v53  ;;  %v1185_v61 = vrot.slane %v1085_v46, 1 }
 0x144   : > { %3598 = vst [vmem:[#allocation3_spill] sm:$0xff] %v2691_v0  ;;  %v1456_v19 = vmul.f32 0.125, %v2677_v40  ;;  %v1063_v33 = vmul.f32 0.375, %v943_v47  ;;  %v1014_v4 = vadd.f32 %v997_v28, %v982_v44  ;;  %v1055_v62 = vadd.f32 %v1047_v2, %v2656_v52  ;;  %v2239_v28 = vld [vmem:[%s2579_s15 + $0x48] sm:$0xff] }
 0x145   : > { %v1111_v1 = vadd.f32 %v1102_v55, %v2683_v51  ;;  %v990_v6 = vadd.f32 %v982_v44, %v974_v50  ;;  %v2697_v7 = vmul.f32 0.125, %v676_v57  ;;  %v1288_v8 = vadd.f32 %v1280_v60, %v1272_v35  ;;  %1983 = vrot.lane.b32.xlu1 %v2239_v28, %s2298_s16 }
 0x146   : > { %v1144_v9 = vsel %vm272_vm0, %v1085_v46, %v1127_v56  ;;  %v1201_v10 = vsel %vm1175_vm1, %v1185_v61, %v1127_v56  ;;  %v783_v11 = vpop.f32.mrf.mxu1  ;;  %v2703_v13 = vmul.f32 0.375, %v2677_v40  ;;  %v1071_v37 = vadd.f32 %v1063_v33, %v1055_v62 }
 0x147   : > { %v1321_v32 = vrot.slane %v1111_v1, 7  ;;  %v967_v38 = vmul.f32 0.375, %v676_v57  ;;  %v2705_v52 = vadd.f32 %v1216_v63, %v1208_v27  ;;  %v2708_v5 = vadd.f32 %v1456_v19, %v2681_v41 }
 0x148   : > { %v1377_v16 = vrot.slane %v1111_v1, 1  ;;  %v1005_v17 = vadd.f32 %v2697_v7, %v990_v6  ;;  %v876_v18 = vpop.f32.mrf.mxu2  ;;  %v1209_v20 = vmul.f32 0.125, %v1144_v9  ;;  %v2713_v21 = vmul.f32 0.375, %v1085_v46 }
 0x149   : > { %3599 = vst [vmem:[#allocation4_spill] sm:$0xff] %v2708_v5  ;;  %v1297_v14 = vmul.f32 0.125, %v1201_v10  ;;  %v2715_v22 = vmul.f32 0.125, %v783_v11  ;;  %v2717_v23 = vadd.f32 %v1296_v49, %v1288_v8  ;;  %v1095_v24 = vadd.f32 %v1078_v3, %v1063_v33 }
 0x14a   : > { %v1160_v25 = vrot.slane %v1005_v17, 1  ;;  %v1265_v26 = vmul.f32 0.125, %v1005_v17  ;;  %v1337_v54 = vsel %vm272_vm0, %v1111_v1, %v1321_v32  ;;  %v1022_v30 = vadd.f32 %v1014_v4, %v967_v38  ;;  %v945_v15 = vpop.f32.mrf.mxu3 }
 0x14b   : > { %3600 = vst [vmem:[#allocation5_spill] sm:$0xff] %v2717_v23  ;;  %v1086_v39 = vadd.f32 %v2715_v22, %v1071_v37  ;;  %v2725_v48 = vmul.f32 0.125, %v876_v18  ;;  %v1393_v2 = vsel %vm1175_vm1, %v1377_v16, %v1321_v32  ;;  %v1048_v42 = vmul.f32 0.375, %v783_v11 }
 0x14c   : > { %v2732_v3 = vsel %vm1175_vm1, %v1160_v25, %v1005_v17  ;;  %v1273_v27 = vadd.f32 %v1265_v26, %v2713_v21  ;;  %v2735_v43 = vmul.f32 0.375, %v1111_v1  ;;  %v975_v44 = vadd.f32 %v967_v38, %v2664_v29  ;;  %v678_v29 = vpop.f32.mrf.mxu0 }
 0x14d   : > { %v1281_v12 = vmul.f32 0.375, %v2732_v3  ;;  %v983_v45 = vmul.f32 0.375, %v876_v18  ;;  %v1128_v46 = vrot.slane %v1086_v39, 7  ;;  %v1186_v47 = vrot.slane %v1086_v39, 1 }
 0x14e   : > { %v1031_v49 = vadd.f32 %v1022_v30, %v2725_v48  ;;  %v2740_v50 = vmul.f32 0.125, %v945_v15  ;;  %v1527_v35 = vsel %vm1504_vm2, %v2717_v23, 0.0  ;;  %v1401_v55 = vmul.f32 0.125, %v1337_v54  ;;  %v786_v16 = vpop.f32.mrf.mxu1 }
 0x14f   : > { %v1489_v56 = vmul.f32 0.125, %v1393_v2  ;;  %v1289_v57 = vadd.f32 %v1281_v12, %v1273_v27  ;;  %v1217_v60 = vmul.f32 0.375, %v1005_v17  ;;  %v1103_v61 = vadd.f32 %v1095_v24, %v1048_v42 }
 0x150   : > { %v1353_v63 = vrot.slane %v1031_v49, 1  ;;  %v1064_v19 = vmul.f32 0.375, %v945_v15  ;;  %v1056_v1 = vadd.f32 %v1048_v42, %v2683_v51  ;;  %v991_v4 = vadd.f32 %v983_v45, %v975_v44 }
 0x151   : > { %v2744_v33 = vadd.f32 %v1297_v14, %v1289_v57  ;;  %v1457_v62 = vmul.f32 0.125, %v1031_v49  ;;  %v1145_v6 = vsel %vm272_vm0, %v1086_v39, %v1128_v46  ;;  %v1202_v8 = vsel %vm1175_vm1, %v1186_v47, %v1128_v46 }
 0x152   : > { %v2750_v9 = vsel %vm1175_vm1, %v1353_v63, %v1031_v49  ;;  %v1112_v10 = vadd.f32 %v1103_v61, %v2740_v50  ;;  %v1409_v11 = vmul.f32 0.375, %v1031_v49  ;;  %v2755_v38 = vmul.f32 0.125, %v678_v29  ;;  %v948_v61 = vpop.f32.mrf.mxu3  ;;  %v2242_v63 = vld [vmem:[%s2579_s15 + $0x78] sm:$0xff] }
 0x153   : > { %3601 = vst [vmem:[#allocation6_spill] sm:$0xff] %v2744_v33  ;;  %v1465_v37 = vadd.f32 %v1457_v62, %v2735_v43  ;;  %v1473_v32 = vmul.f32 0.375, %v2750_v9  ;;  %v2757_v51 = vadd.f32 %v1217_v60, %v1209_v20  ;;  %v2759_v17 = vmul.f32 0.375, %v1086_v39  ;;  %v878_v20 = vpop.f32.mrf.mxu2  ;;  %1989 = vrot.lane.b32.xlu1 %v2242_v63, %s2298_s16 }
 0x154   : > { %3602 = vst [vmem:[#allocation7_spill] sm:$0xff] %v2750_v9  ;;  %v1015_v18 = vadd.f32 %v2697_v7, %v983_v45  ;;  %v1072_v14 = vadd.f32 %v1064_v19, %v1056_v1  ;;  %v1528_v24 = vsel %vm1504_vm2, %v2744_v33, 0.0  ;;  %v1210_v25 = vmul.f32 0.125, %v1145_v6 }
 0x155   : > { %v968_v26 = vmul.f32 0.375, %v678_v29  ;;  %v1006_v28 = vadd.f32 %v2755_v38, %v991_v4  ;;  %v1298_v54 = vmul.f32 0.125, %v1202_v8  ;;  %v1322_v30 = vrot.slane %v1112_v10, 7 }
 0x156   : > { %v1378_v15 = vrot.slane %v1112_v10, 1  ;;  %v1080_v2 = vmul.f32 0.125, %v786_v16  ;;  %v2765_v27 = vadd.f32 %v1409_v11, %v1401_v55  ;;  %v1481_v39 = vadd.f32 %v1473_v32, %v1465_v37  ;;  %v2241_v55 = vld [vmem:[%s2579_s15 + $0x68] sm:$0xff] }
 0x157   : > { %v1096_v7 = vadd.f32 %v2715_v22, %v1064_v19  ;;  %v1161_v42 = vrot.slane %v1006_v28, 1  ;;  %v1529_v44 = vadd.f32 %v1528_v24, %v1527_v35  ;;  %v2768_v12 = vmul.f32 0.375, %v1112_v10  ;;  %1987 = vrot.lane.b32.xlu0 %v2241_v55, %s2298_s16 }
 0x158   : > { %v1266_v45 = vmul.f32 0.125, %v1006_v28  ;;  %v1087_v46 = vadd.f32 %v1080_v2, %v1072_v14  ;;  %v1023_v47 = vadd.f32 %v1015_v18, %v968_v26  ;;  %v1049_v57 = vmul.f32 0.375, %v786_v16 }
 0x159   : > { %3603 = vst [vmem:[#allocation8_spill] sm:$0xff] %v2768_v12  ;;  %v2771_v49 = vsel %vm1175_vm1, %v1161_v42, %v1006_v28  ;;  %v2773_v60 = vmul.f32 0.125, %v878_v20  ;;  %v1338_v29 = vsel %vm272_vm0, %v1112_v10, %v1322_v30  ;;  %v1394_v22 = vsel %vm1175_vm1, %v1378_v15, %v1322_v30 }
 0x15a   : > { %v1274_v35 = vadd.f32 %v1266_v45, %v2759_v17  ;;  %v1282_v19 = vmul.f32 0.375, %v2771_v49  ;;  %v2783_v1 = vadd.f32 %v1489_v56, %v1481_v39  ;;  %v976_v4 = vadd.f32 %v968_v26, %v2725_v48  ;;  %v681_v39 = vpop.f32.mrf.mxu0 }
 0x15b   : > { %v1218_v62 = vmul.f32 0.375, %v1006_v28  ;;  %v1032_v6 = vadd.f32 %v1023_v47, %v2773_v60  ;;  %v1129_v11 = vrot.slane %v1087_v46, 7  ;;  %v984_v10 = vmul.f32 0.375, %v878_v20  ;;  %2031 = vrot.lane.b32.xlu1 %v2668_v34, %s2297_s20 }
 0x15c   : > { %3604 = vst [vmem:[#allocation9_spill] sm:$0xff] %v2783_v1  ;;  %v1290_v8 = vadd.f32 %v1282_v19, %v1274_v35  ;;  %v2787_v37 = vmul.f32 0.125, %v948_v61  ;;  %v1402_v32 = vmul.f32 0.125, %v1338_v29  ;;  %v1490_v16 = vmul.f32 0.125, %v1394_v22 }
 0x15d   : > { %v1104_v18 = vadd.f32 %v1096_v7, %v1049_v57  ;;  %v1187_v14 = vrot.slane %v1087_v46, 1  ;;  %v1057_v30 = vadd.f32 %v1049_v57, %v2740_v50  ;;  %v1354_v56 = vrot.slane %v1032_v6, 1 }
 0x15e   : > { %v2789_v24 = vadd.f32 %v1298_v54, %v1290_v8  ;;  %v1065_v15 = vmul.f32 0.375, %v948_v61  ;;  %v2794_v48 = vsel %vm1504_vm2, %v2783_v1, 0.0  ;;  %v2796_v26 = vadd.f32 %v1218_v62, %v1210_v25  ;;  %v788_v61 = vpop.f32.mrf.mxu1 }
 0x15f   : > { %3606 = vst [vmem:[#allocation11_spill] sm:$0xff] %v2794_v48  ;;  %v1458_v28 = vmul.f32 0.125, %v1032_v6  ;;  %v1113_v20 = vadd.f32 %v1104_v18, %v2787_v37  ;;  %v1146_v42 = vsel %vm272_vm0, %v1087_v46, %v1129_v11  ;;  %v2800_v7 = vmul.f32 0.375, %v1087_v46  ;;  %v881_v18 = vpop.f32.mrf.mxu2 }
 0x160   : > { %3605 = vst [vmem:[#allocation10_spill] sm:$0xff] %v2789_v24  ;;  %v992_v54 = vadd.f32 %v984_v10, %v976_v4  ;;  %v2803_v45 = vsel %vm1175_vm1, %v1354_v56, %v1032_v6  ;;  %v1203_v50 = vsel %vm1175_vm1, %v1187_v14, %v1129_v11  ;;  %v1410_v47 = vmul.f32 0.375, %v1032_v6  ;;  %v950_v14 = vpop.f32.mrf.mxu3 }
 0x161   : > { %3607 = vst [vmem:[#allocation12_spill] sm:$0xff] %v2803_v45  ;;  %v1466_v57 = vadd.f32 %v1458_v28, %v2768_v12  ;;  %v1474_v25 = vmul.f32 0.375, %v2803_v45  ;;  %v1530_v63 = vsel %vm1504_vm2, %v2789_v24, 0.0  ;;  %v1073_v55 = vadd.f32 %v1065_v15, %v1057_v30 }
 0x162   : > { %v1323_v29 = vrot.slane %v1113_v20, 7  ;;  %v1000_v22 = vmul.f32 0.125, %v681_v39  ;;  %v1016_v46 = vadd.f32 %v2755_v38, %v984_v10  ;;  %v1097_v35 = vadd.f32 %v1080_v2, %v1065_v15 }
 0x163   : > { %v1379_v19 = vrot.slane %v1113_v20, 1  ;;  %v969_v4 = vmul.f32 0.375, %v681_v39  ;;  %v1482_v62 = vadd.f32 %v1474_v25, %v1466_v57  ;;  %v1050_v8 = vmul.f32 0.375, %v788_v61  ;;  %2037 = vrot.lane.b32.xlu1 %v2721_v31, %s2297_s20  ;;  %v683_v31 = vpop.f32.mrf.mxu0 }
 0x164   : > { %v1007_v6 = vadd.f32 %v1000_v22, %v992_v54  ;;  %v1081_v11 = vmul.f32 0.125, %v788_v61  ;;  %v2813_v56 = vadd.f32 %v1530_v63, %v1529_v44  ;;  %v1211_v28 = vmul.f32 0.125, %v1146_v42 }
 0x165   : > { %v1299_v30 = vmul.f32 0.125, %v1203_v50  ;;  %v2815_v58 = vadd.f32 %v1410_v47, %v1402_v32  ;;  %v1339_v1 = vsel %vm272_vm0, %v1113_v20, %v1323_v29  ;;  %v1395_v2 = vsel %vm1175_vm1, %v1379_v19, %v1323_v29 }
 0x166   : > { %v1162_v34 = vrot.slane %v1007_v6, 1  ;;  %v1267_v24 = vmul.f32 0.125, %v1007_v6  ;;  %v1088_v38 = vadd.f32 %v1081_v11, %v1073_v55  ;;  %v1024_v10 = vadd.f32 %v1016_v46, %v969_v4 }
 0x167   : > { %3608 = vst [vmem:[#allocation13_spill] sm:$0xff] %v2815_v58  ;;  %v2819_v15 = vmul.f32 0.125, %v881_v18  ;;  %v2821_v39 = vmul.f32 0.125, %v950_v14  ;;  %v2823_v54 = vadd.f32 %v1490_v16, %v1482_v62  ;;  %v1105_v42 = vadd.f32 %v1097_v35, %v1050_v8 }
 0x168   : > { %v2826_v44 = vsel %vm1175_vm1, %v1162_v34, %v1007_v6  ;;  %v1275_v32 = vadd.f32 %v1267_v24, %v2800_v7  ;;  %v1219_v50 = vmul.f32 0.375, %v1007_v6  ;;  %v1130_v57 = vrot.slane %v1088_v38, 7 }
 0x169   : > { %3609 = vst [vmem:[#allocation14_spill] sm:$0xff] %v2823_v54  ;;  %v1283_v47 = vmul.f32 0.375, %v2826_v44  ;;  %v985_v25 = vmul.f32 0.375, %v881_v18  ;;  %v2830_v61 = vmul.f32 0.375, %v1113_v20  ;;  %v977_v63 = vadd.f32 %v969_v4, %v2773_v60 }
 0x16a   : > { %v1188_v55 = vrot.slane %v1088_v38, 1  ;;  %v1033_v29 = vadd.f32 %v1024_v10, %v2819_v15  ;;  %v1403_v16 = vmul.f32 0.125, %v1339_v1  ;;  %v1491_v46 = vmul.f32 0.125, %v1395_v2 }
 0x16b   : > { %3610 = vst [vmem:[#allocation15_spill] sm:$0xff] %v2830_v61  ;;  %v1291_v19 = vadd.f32 %v1283_v47, %v1275_v32  ;;  %v1114_v24 = vadd.f32 %v1105_v42, %v2821_v39  ;;  %v1058_v35 = vadd.f32 %v1050_v8, %v2787_v37  ;;  %v1066_v18 = vmul.f32 0.375, %v950_v14 }
 0x16c   : > { %v1355_v62 = vrot.slane %v1033_v29, 1  ;;  %v1459_v6 = vmul.f32 0.125, %v1033_v29  ;;  %v2840_v20 = vsel %vm1504_vm2, %v2823_v54, 0.0  ;;  %v2842_v60 = vadd.f32 %v1219_v50, %v1211_v28  ;;  %v791_v28 = vpop.f32.mrf.mxu1  ;;  %v883_v50 = vpop.f32.mrf.mxu2 }
 0x16d   : > { %3611 = vst [vmem:[#allocation16_spill] sm:$0xff] %v2840_v20  ;;  %v1147_v4 = vsel %vm272_vm0, %v1088_v38, %v1130_v57  ;;  %v993_v34 = vadd.f32 %v985_v25, %v977_v63  ;;  %v2845_v1 = vadd.f32 %v1299_v30, %v1291_v19  ;;  %v1204_v2 = vsel %vm1175_vm1, %v1188_v55, %v1130_v57 }
 0x16e   : > { %v1017_v10 = vadd.f32 %v1000_v22, %v985_v25  ;;  %v2849_v37 = vsel %vm1175_vm1, %v1355_v62, %v1033_v29  ;;  %v1411_v8 = vmul.f32 0.375, %v1033_v29  ;;  %v1467_v14 = vadd.f32 %v1459_v6, %v2830_v61 }
 0x16f   : > { %3612 = vst [vmem:[#allocation17_spill] sm:$0xff] %v2845_v1  ;;  %v1475_v32 = vmul.f32 0.375, %v2849_v37  ;;  %v1324_v42 = vrot.slane %v1114_v24, 7  ;;  %v2853_v47 = vmul.f32 0.375, %v1088_v38  ;;  %v1074_v63 = vadd.f32 %v1066_v18, %v1058_v35  ;;  %v953_v35 = vpop.f32.mrf.mxu3 }
 0x170   : > { %3613 = vst [vmem:[#allocation18_spill] sm:$0xff] %v2849_v37  ;;  %v1380_v54 = vrot.slane %v1114_v24, 1  ;;  %v970_v30 = vmul.f32 0.375, %v683_v31  ;;  %v1212_v19 = vmul.f32 0.125, %v1147_v4  ;;  %v1300_v33 = vmul.f32 0.125, %v1204_v2 }
 0x171   : > { %v1098_v57 = vadd.f32 %v1081_v11, %v1066_v18  ;;  %v1001_v22 = vmul.f32 0.125, %v683_v31  ;;  %v1532_v25 = vsel %vm1504_vm2, %v2845_v1, 0.0  ;;  %v1082_v29 = vmul.f32 0.125, %v791_v28 }
 0x172   : > { %v1025_v55 = vadd.f32 %v1017_v10, %v970_v30  ;;  %v2857_v62 = vmul.f32 0.125, %v883_v50  ;;  %v2859_v6 = vadd.f32 %v1411_v8, %v1403_v16  ;;  %v1483_v23 = vadd.f32 %v1475_v32, %v1467_v14 }
 0x173   : > { %v1340_v38 = vsel %vm272_vm0, %v1114_v24, %v1324_v42  ;;  %v1008_v20 = vadd.f32 %v1001_v22, %v993_v34  ;;  %v1396_v48 = vsel %vm1175_vm1, %v1380_v54, %v1324_v42  ;;  %v1051_v4 = vmul.f32 0.375, %v791_v28 }
 0x174   : > { %3614 = vst [vmem:[#allocation19_spill] sm:$0xff] %v2859_v6  ;;  %v1089_v2 = vadd.f32 %v1082_v29, %v1074_v63  ;;  %v1034_v11 = vadd.f32 %v1025_v55, %v2857_v62  ;;  %v2865_v18 = vadd.f32 %v1532_v25, %v2813_v56  ;;  %v2867_v31 = vmul.f32 0.375, %v1114_v24 }
 0x175   : > { %v1163_v10 = vrot.slane %v1008_v20, 1  ;;  %v1268_v1 = vmul.f32 0.125, %v1008_v20  ;;  %v1404_v16 = vmul.f32 0.125, %v1340_v38  ;;  %v2869_v32 = vmul.f32 0.125, %v953_v35 }
 0x176   : > { %3615 = vst [vmem:[#allocation20_spill] sm:$0xff] %v2867_v31  ;;  %v1131_v8 = vrot.slane %v1089_v2, 7  ;;  %v1189_v14 = vrot.slane %v1089_v2, 1  ;;  %v2871_v34 = vadd.f32 %v1491_v46, %v1483_v23  ;;  %v1492_v0 = vmul.f32 0.125, %v1396_v48 }
 0x177   : > { %v2874_v54 = vsel %vm1175_vm1, %v1163_v10, %v1008_v20  ;;  %v1276_v42 = vadd.f32 %v1268_v1, %v2853_v47  ;;  %v1106_v28 = vadd.f32 %v1098_v57, %v1051_v4  ;;  %v986_v24 = vmul.f32 0.375, %v883_v50  ;;  %v686_v1 = vpop.f32.mrf.mxu0 }
 0x178   : > { %3616 = vst [vmem:[#allocation21_spill] sm:$0xff] %v2871_v34  ;;  %v1284_v56 = vmul.f32 0.375, %v2874_v54  ;;  %v1356_v63 = vrot.slane %v1034_v11, 1  ;;  %v978_v25 = vadd.f32 %v970_v30, %v2819_v15  ;;  %v1220_v55 = vmul.f32 0.375, %v1008_v20 }
 0x179   : > { %v1148_v38 = vsel %vm272_vm0, %v1089_v2, %v1131_v8  ;;  %v1460_v5 = vmul.f32 0.125, %v1034_v11  ;;  %v1205_v23 = vsel %vm1175_vm1, %v1189_v14, %v1131_v8  ;;  %v1115_v46 = vadd.f32 %v1106_v28, %v2869_v32  ;;  %v793_v28 = vpop.f32.mrf.mxu1 }
 0x17a   : > { %v1292_v37 = vadd.f32 %v1284_v56, %v1276_v42  ;;  %v2882_v48 = vsel %vm1175_vm1, %v1356_v63, %v1034_v11  ;;  %v1412_v10 = vmul.f32 0.375, %v1034_v11  ;;  %v1067_v61 = vmul.f32 0.375, %v953_v35 }
 0x17b   : > { %3617 = vst [vmem:[#allocation22_spill] sm:$0xff] %v2882_v48  ;;  %v1468_v57 = vadd.f32 %v1460_v5, %v2867_v31  ;;  %v1476_v50 = vmul.f32 0.375, %v2882_v48  ;;  %v2889_v15 = vsel %vm1504_vm2, %v2871_v34, 0.0  ;;  %v1059_v20 = vadd.f32 %v1051_v4, %v2821_v39  ;;  %v886_v31 = vpop.f32.mrf.mxu2 }
 0x17c   : > { %3618 = vst [vmem:[#allocation23_spill] sm:$0xff] %v2889_v15  ;;  %v2892_v30 = vmul.f32 0.375, %v1089_v2  ;;  %v994_v8 = vadd.f32 %v986_v24, %v978_v25  ;;  %v2894_v14 = vadd.f32 %v1220_v55, %v1212_v19  ;;  %v2896_v42 = vadd.f32 %v1300_v33, %v1292_v37  ;;  %v955_v2 = vpop.f32.mrf.mxu3 }
 0x17d   : > { %v1018_v56 = vadd.f32 %v1001_v22, %v986_v24  ;;  %v971_v11 = vmul.f32 0.375, %v686_v1  ;;  %v2898_v5 = vmul.f32 0.125, %v1148_v38  ;;  %v1301_v63 = vmul.f32 0.125, %v1205_v23 }
 0x17e   : > { %3619 = vst [vmem:[#allocation24_spill] sm:$0xff] %v2896_v42  ;;  %v1325_v35 = vrot.slane %v1115_v46, 7  ;;  %v1002_v48 = vmul.f32 0.125, %v686_v1  ;;  %v2900_v34 = vadd.f32 %v1412_v10, %v1404_v16  ;;  %v1484_v15 = vadd.f32 %v1476_v50, %v1468_v57 }
 0x17f   : > { %v1075_v39 = vadd.f32 %v1067_v61, %v1059_v20  ;;  %v1099_v4 = vadd.f32 %v1082_v29, %v1067_v61  ;;  %v1381_v25 = vrot.slane %v1115_v46, 1  ;;  %v1052_v55 = vmul.f32 0.375, %v793_v28 }
 0x180   : > { %3620 = vst [vmem:[#allocation25_spill] sm:$0xff] %v2900_v34  ;;  %v1009_v19 = vadd.f32 %v1002_v48, %v994_v8  ;;  %v1083_v33 = vmul.f32 0.125, %v793_v28  ;;  %v1534_v37 = vsel %vm1504_vm2, %v2896_v42, 0.0  ;;  %v1429_v22 = vmul.f32 0.375, %v1115_v46 }
 0x181   : > { %v1026_v24 = vadd.f32 %v1018_v56, %v971_v11  ;;  %v2904_v38 = vmul.f32 0.125, %v886_v31  ;;  %v1341_v23 = vsel %vm272_vm0, %v1115_v46, %v1325_v35  ;;  %v1068_v10 = vmul.f32 0.375, %v955_v2 }
 0x182   : > { %v1164_v1 = vrot.slane %v1009_v19, 1  ;;  %v1269_v16 = vmul.f32 0.125, %v1009_v19  ;;  %v2907_v57 = vadd.f32 %v1492_v0, %v1484_v15  ;;  %v979_v61 = vadd.f32 %v971_v11, %v2857_v62 }
 0x183   : > { %v1090_v29 = vadd.f32 %v1083_v33, %v1075_v39  ;;  %v1035_v50 = vadd.f32 %v1026_v24, %v2904_v38  ;;  %v1397_v20 = vsel %vm1175_vm1, %v1381_v25, %v1325_v35  ;;  %v1060_v28 = vadd.f32 %v1052_v55, %v2869_v32 }
 0x184   : > { %3621 = vst [vmem:[#allocation26_spill] sm:$0xff] %v2907_v57  ;;  %v2913_v8 = vsel %vm1175_vm1, %v1164_v1, %v1009_v19  ;;  %v1277_v56 = vadd.f32 %v1269_v16, %v2892_v30  ;;  %v1535_v46 = vadd.f32 %v1534_v37, %v2865_v18  ;;  %v1405_v42 = vmul.f32 0.125, %v1341_v23 }
 0x185   : > { %v1285_v0 = vmul.f32 0.375, %v2913_v8  ;;  %v1357_v15 = vrot.slane %v1035_v50, 1  ;;  %v987_v34 = vmul.f32 0.375, %v886_v31  ;;  %v1413_v62 = vmul.f32 0.375, %v1035_v50 }
 0x186   : > { %v1461_v11 = vmul.f32 0.125, %v1035_v50  ;;  %v1076_v39 = vadd.f32 %v1068_v10, %v1060_v28  ;;  %v1493_v24 = vmul.f32 0.125, %v1397_v20  ;;  %v1132_v35 = vrot.slane %v1090_v29, 7 }
 0x187   : > { %v1293_v6 = vadd.f32 %v1285_v0, %v1277_v56  ;;  %v1373_v25 = vsel %vm1175_vm1, %v1357_v15, %v1035_v50  ;;  %v2922_v1 = vsel %vm1504_vm2, %v2907_v57, 0.0  ;;  %v1190_v16 = vrot.slane %v1090_v29, 1 }
 0x188   : > { %3622 = vst [vmem:[#allocation27_spill] sm:$0xff] %v2922_v1  ;;  %v1421_v45 = vadd.f32 %v1413_v62, %v1405_v42  ;;  %v1469_v18 = vadd.f32 %v1461_v11, %v1429_v22  ;;  %v1477_v23 = vmul.f32 0.375, %v1373_v25  ;;  %v1091_v9 = vadd.f32 %v1083_v33, %v1076_v39  ;;  %v688_v62 = vpop.f32.mrf.mxu0 }
 0x189   : > { %v2924_v37 = vadd.f32 %v1301_v63, %v1293_v6  ;;  %v1100_v31 = vadd.f32 %v1083_v33, %v1068_v10  ;;  %v1221_v41 = vmul.f32 0.375, %v1009_v19  ;;  %v995_v12 = vadd.f32 %v987_v34, %v979_v61 }
 0x18a   : > { %v1107_v28 = vadd.f32 %v1099_v4, %v1052_v55  ;;  %v1109_v20 = vmul.f32 0.125, %v955_v2  ;;  %v1149_v56 = vsel %vm272_vm0, %v1090_v29, %v1132_v35  ;;  %v1019_v0 = vadd.f32 %v1002_v48, %v987_v34 }
 0x18b   : > { %v1108_v50 = vadd.f32 %v1100_v31, %v1052_v55  ;;  %v1133_v15 = vrot.slane %v1091_v9, 7  ;;  %v1206_v57 = vsel %vm1175_vm1, %v1190_v16, %v1132_v35  ;;  %v1445_v1 = vmul.f32 0.125, %v1373_v25 }
 0x18c   : > { %v1116_v58 = vadd.f32 %v1109_v20, %v1107_v28  ;;  %v1191_v42 = vrot.slane %v1091_v9, 1  ;;  %v1536_v6 = vsel %vm1504_vm2, %v2924_v37, 0.0  ;;  %v1437_v63 = vadd.f32 %v1429_v22, %v1421_v45  ;;  %v888_v45 = vpop.f32.mrf.mxu2 }
 0x18d   : > { %v1485_v33 = vadd.f32 %v1477_v23, %v1469_v18  ;;  %v1117_v19 = vadd.f32 %v1108_v50, %v2869_v32  ;;  %v1229_v4 = vadd.f32 %v1221_v41, %v2898_v5  ;;  %v1238_v2 = vmul.f32 0.375, %v1090_v29 }
 0x18e   : > { %v1326_v10 = vrot.slane %v1116_v58, 7  ;;  %v1382_v34 = vrot.slane %v1116_v58, 1  ;;  %v1214_v48 = vmul.f32 0.125, %v1149_v56  ;;  %v1150_v55 = vsel %vm272_vm0, %v1091_v9, %v1133_v15 }
 0x18f   : > { %v1327_v61 = vrot.slane %v1117_v19, 7  ;;  %v972_v11 = vmul.f32 0.375, %v688_v62  ;;  %v2933_v39 = vadd.f32 %v1536_v6, %v1535_v46  ;;  %v1302_v35 = vmul.f32 0.125, %v1206_v57 }
 0x190   : > { %v1207_v25 = vsel %vm1175_vm1, %v1191_v42, %v1133_v15  ;;  %v1383_v16 = vrot.slane %v1117_v19, 1  ;;  %v2936_v22 = vadd.f32 %v1445_v1, %v1437_v63  ;;  %v2938_v32 = vadd.f32 %v1493_v24, %v1485_v33 }
 0x191   : > { %v1239_v41 = vmul.f32 0.375, %v1091_v9  ;;  %v1342_v5 = vsel %vm272_vm0, %v1116_v58, %v1326_v10  ;;  %v1215_v29 = vmul.f32 0.125, %v1150_v55  ;;  %v1343_v18 = vsel %vm272_vm0, %v1117_v19, %v1327_v61 }
 0x192   : > { %v1398_v23 = vsel %vm1175_vm1, %v1382_v34, %v1326_v10  ;;  %v1003_v31 = vmul.f32 0.125, %v688_v62  ;;  %v2943_v46 = vmul.f32 0.125, %v1207_v25  ;;  %v2945_v57 = vmul.f32 0.375, %v1116_v58 }
 0x193   : > { %v980_v28 = vadd.f32 %v972_v11, %v2904_v38  ;;  %v988_v20 = vmul.f32 0.375, %v888_v45  ;;  %v1399_v1 = vsel %vm1175_vm1, %v1383_v16, %v1327_v61  ;;  %v1406_v24 = vmul.f32 0.125, %v1342_v5 }
 0x194   : > { %v2949_v56 = vmul.f32 0.375, %v1117_v19  ;;  %v1010_v9 = vadd.f32 %v1003_v31, %v995_v12  ;;  %v1407_v50 = vmul.f32 0.125, %v1343_v18  ;;  %v2951_v15 = vmul.f32 0.125, %v1398_v23 }
 0x195   : > { %v996_v42 = vadd.f32 %v988_v20, %v980_v28  ;;  %v1020_v6 = vadd.f32 %v1003_v31, %v988_v20  ;;  %v1029_v10 = vmul.f32 0.125, %v888_v45  ;;  %v2953_v58 = vmul.f32 0.125, %v1399_v1 }
 0x196   : > { %v1165_v63 = vrot.slane %v1010_v9, 1  ;;  %v1222_v62 = vmul.f32 0.375, %v1010_v9  ;;  %v1270_v33 = vmul.f32 0.125, %v1010_v9  ;;  %v1027_v55 = vadd.f32 %v1019_v0, %v972_v11 }
 0x197   : > { %v1011_v34 = vadd.f32 %v1003_v31, %v996_v42  ;;  %v1240_v61 = vadd.f32 %v2662_v36, %v2705_v52  ;;  %v1028_v12 = vadd.f32 %v1020_v6, %v972_v11  ;;  %v1241_v16 = vadd.f32 %v2713_v21, %v2757_v51 }
 0x198   : > { %v1182_v19 = vsel %vm1175_vm1, %v1165_v63, %v1010_v9  ;;  %v1278_v25 = vadd.f32 %v1270_v33, %v1238_v2  ;;  %v1230_v28 = vadd.f32 %v1222_v62, %v1214_v48  ;;  %v1036_v20 = vadd.f32 %v1029_v10, %v1027_v55 }
 0x199   : > { %v1286_v5 = vmul.f32 0.375, %v1182_v19  ;;  %v1166_v18 = vrot.slane %v1011_v34, 1  ;;  %v1223_v23 = vmul.f32 0.375, %v1011_v34  ;;  %v1242_v45 = vadd.f32 %v2759_v17, %v2796_v26 }
 0x19a   : > { %v1243_v0 = vadd.f32 %v2800_v7, %v2842_v60  ;;  %v1248_v36 = vmul.f32 0.125, %v2686_v53  ;;  %v1249_v1 = vmul.f32 0.125, %v2732_v3  ;;  %v1037_v21 = vadd.f32 %v1028_v12, %v2904_v38  ;;  %v3624_v12 = vld [vmem:[#allocation13_spill] sm:$0xff] }
 0x19b   : > { %v1294_v52 = vadd.f32 %v1286_v5, %v1278_v25  ;;  %v1183_v31 = vsel %vm1175_vm1, %v1166_v18, %v1011_v34  ;;  %v1231_v11 = vadd.f32 %v1223_v23, %v1215_v29  ;;  %v1244_v51 = vadd.f32 %v2853_v47, %v2894_v14  ;;  %v3626_v18 = vld [vmem:[#allocation2_spill] sm:$0xff] }
 0x19c   : > { %v1245_v48 = vadd.f32 %v2892_v30, %v1229_v4  ;;  %v1250_v17 = vmul.f32 0.125, %v2771_v49  ;;  %v1246_v26 = vadd.f32 %v1238_v2, %v1230_v28  ;;  %v1251_v7 = vmul.f32 0.125, %v2826_v44 }
 0x19d   : > { %v1252_v53 = vmul.f32 0.125, %v2874_v54  ;;  %v1253_v60 = vmul.f32 0.125, %v2913_v8  ;;  %v1254_v9 = vmul.f32 0.125, %v1182_v19  ;;  %v1255_v29 = vmul.f32 0.125, %v1183_v31 }
 0x19e   : > { %v2975_v42 = vadd.f32 %v1248_v36, %v1240_v61  ;;  %v1271_v3 = vmul.f32 0.125, %v1011_v34  ;;  %v2977_v38 = vadd.f32 %v1302_v35, %v1294_v52  ;;  %v1247_v6 = vadd.f32 %v1239_v41, %v1231_v11  ;;  %v3630_v11 = vld [vmem:[#allocation15_spill] sm:$0xff] }
 0x19f   : > { %v2979_v47 = vadd.f32 %v1249_v1, %v1241_v16  ;;  %v1287_v30 = vmul.f32 0.375, %v1183_v31  ;;  %v2981_v14 = vadd.f32 %v1250_v17, %v1242_v45  ;;  %v1358_v4 = vrot.slane %v1036_v20, 1  ;;  %v3625_v16 = vld [vmem:[#allocation8_spill] sm:$0xff]  ;;  %v3629_v31 = vld [vmem:[#allocation19_spill] sm:$0xff]  ;;  %v3631_v1 = vld [vmem:[#allocation25_spill] sm:$0xff] }
 0x1a0   : > { %v1279_v49 = vadd.f32 %v1271_v3, %v1239_v41  ;;  %v1414_v44 = vmul.f32 0.375, %v1036_v20  ;;  %v2983_v2 = vadd.f32 %v1251_v7, %v1243_v0  ;;  %v2985_v54 = vadd.f32 %v1252_v53, %v1244_v51  ;;  %v3628_v0 = vld [vmem:[#allocation12_spill] sm:$0xff]  ;;  %v3633_v17 = vld [vmem:[#allocation18_spill] sm:$0xff] }
 0x1a1   : > { %v1415_v8 = vmul.f32 0.375, %v1037_v21  ;;  %v1416_v63 = vadd.f32 %v2703_v13, %v2689_v59  ;;  %v2989_v62 = vadd.f32 %v1253_v60, %v1245_v48  ;;  %v2991_v35 = vadd.f32 %v1254_v9, %v1246_v26  ;;  %v3632_v51 = vld [vmem:[#allocation20_spill] sm:$0xff]  ;;  %v3634_v7 = vld [vmem:[#allocation22_spill] sm:$0xff] }
 0x1a2   : > { %v1359_v33 = vrot.slane %v1037_v21, 1  ;;  %v3623_v10 = vrot.slane %v2677_v40, 1  ;;  %v1538_v34 = vsel %vm1504_vm2, %v2977_v38, 0.0  ;;  %v2999_v55 = vadd.f32 %v1255_v29, %v1247_v6 }
 0x1a3   : > { %v1295_v61 = vadd.f32 %v1287_v30, %v1279_v49  ;;  %v1422_v19 = vadd.f32 %v1414_v44, %v1406_v24  ;;  %v1374_v25 = vsel %vm1175_vm1, %v1358_v4, %v1036_v20  ;;  %v1423_v59 = vadd.f32 %v1415_v8, %v1407_v50 }
 0x1a4   : > { %v1368_v41 = vsel %vm1175_vm1, %v3623_v10, %v2677_v40  ;;  %v1433_v13 = vadd.f32 %v2735_v43, %v2765_v27  ;;  %v1434_v5 = vadd.f32 %v3625_v16, %v3624_v12  ;;  %v1432_v23 = vadd.f32 %v3626_v18, %v1416_v63  ;;  %v3627_v40 = vld [vmem:[#allocation7_spill] sm:$0xff] }
 0x1a5   : > { %v1440_v28 = vmul.f32 0.125, %v1368_v41  ;;  %v1441_v45 = vmul.f32 0.125, %v3627_v40  ;;  %v1442_v36 = vmul.f32 0.125, %v3628_v0  ;;  %v1539_v52 = vadd.f32 %v1538_v34, %v2933_v39  ;;  %v3636_v12 = vld [vmem:[#allocation3_spill] sm:$0xff] }
 0x1a6   : > { %v1375_v24 = vsel %vm1175_vm1, %v1359_v33, %v1037_v21  ;;  %v1435_v50 = vadd.f32 %v3630_v11, %v3629_v31  ;;  %v1436_v43 = vadd.f32 %v3632_v51, %v3631_v1  ;;  %v3016_v27 = vadd.f32 %v2943_v46, %v1295_v61  ;;  %v3635_v46 = vld [vmem:[#allocation4_spill] sm:$0xff] }
 0x1a7   : > { %v1438_v48 = vadd.f32 %v2945_v57, %v1422_v19  ;;  %v1443_v26 = vmul.f32 0.125, %v3633_v17  ;;  %v1444_v53 = vmul.f32 0.125, %v3634_v7  ;;  %v1439_v60 = vadd.f32 %v2949_v56, %v1423_v59  ;;  %v3637_v17 = vld [vmem:[#allocation11_spill] sm:$0xff] }
 0x1a8   : > { %v1446_v39 = vmul.f32 0.125, %v1374_v25  ;;  %v1462_v9 = vmul.f32 0.125, %v1036_v20  ;;  %v1472_v29 = vmul.f32 0.375, %v1368_v41  ;;  %v1447_v3 = vmul.f32 0.125, %v1375_v24 }
 0x1a9   : > { %v3022_v6 = vadd.f32 %v1440_v28, %v1432_v23  ;;  %v3024_v30 = vadd.f32 %v1441_v45, %v1433_v13  ;;  %v3026_v49 = vadd.f32 %v1442_v36, %v1434_v5  ;;  %v1505_v44 = vsel %vm1504_vm2, %v2975_v42, 0.0 }
 0x1aa   : > { %v1480_v4 = vadd.f32 %v1472_v29, %v3635_v46  ;;  %v1506_v8 = vsel %vm1504_vm2, %v2979_v47, 0.0  ;;  %v1508_v63 = vsel %vm1504_vm2, %v2981_v14, 0.0  ;;  %v3035_v20 = vadd.f32 %v1443_v26, %v1435_v50  ;;  %v3638_v29 = vld [vmem:[#allocation16_spill] sm:$0xff] }
 0x1ab   : > { %v3037_v33 = vadd.f32 %v1444_v53, %v1436_v43  ;;  %v1463_v10 = vmul.f32 0.125, %v1037_v21  ;;  %v1507_v41 = vadd.f32 %v1506_v8, %v1505_v44  ;;  %v3039_v34 = vadd.f32 %v1446_v39, %v1438_v48 }
 0x1ac   : > { %v1470_v61 = vadd.f32 %v1462_v9, %v2945_v57  ;;  %v1478_v19 = vmul.f32 0.375, %v1374_v25  ;;  %v1510_v59 = vsel %vm1504_vm2, %v2983_v2, 0.0  ;;  %v1479_v13 = vmul.f32 0.375, %v1375_v24 }
 0x1ad   : > { %v3045_v16 = vadd.f32 %v3636_v12, %v1480_v4  ;;  %v1509_v5 = vadd.f32 %v1508_v63, %v1507_v41  ;;  %v1540_v18 = vsel %vm1504_vm2, %v3016_v27, 0.0  ;;  %v1512_v21 = vsel %vm1504_vm2, %v2985_v54, 0.0  ;;  %v3639_v41 = vld [vmem:[#allocation23_spill] sm:$0xff] }
 0x1ae   : > { %v1541_v23 = vadd.f32 %v1540_v18, %v1539_v52  ;;  %v1549_v28 = vsel %vm1504_vm2, %v3022_v6, 0.0  ;;  %v1550_v57 = vsel %vm1504_vm2, %v3024_v30, 0.0  ;;  %v1471_v25 = vadd.f32 %v1463_v10, %v2949_v56 }
 0x1af   : > { %v1511_v40 = vadd.f32 %v1510_v59, %v1509_v5  ;;  %v1551_v45 = vadd.f32 %v1550_v57, %v1549_v28  ;;  %v1552_v0 = vsel %vm1504_vm2, %v3026_v49, 0.0  ;;  %v3058_v36 = vadd.f32 %v1447_v3, %v1439_v60  ;;  %v3640_v5 = vld [vmem:[#allocation27_spill] sm:$0xff] }
 0x1b0   : > { %v1514_v24 = vsel %vm1504_vm2, %v2989_v62, 0.0  ;;  %v1542_v31 = vrot.slane %v1541_v23, 4  ;;  %v1554_v52 = vsel %vm1504_vm2, %v3035_v20, 0.0  ;;  %v1486_v11 = vadd.f32 %v1478_v19, %v1470_v61 }
 0x1b1   : > { %v1513_v50 = vadd.f32 %v1512_v21, %v1511_v40  ;;  %v1553_v1 = vadd.f32 %v1552_v0, %v1551_v45  ;;  %v1571_v56 = vsel %vm1504_vm2, %v3045_v16, 0.0  ;;  %v1516_v51 = vsel %vm1504_vm2, %v2991_v35, 0.0  ;;  %v2237_v21 = vld [vmem:[%s2579_s15 + $0x28] sm:$0xff] }
 0x1b2   : > { %v1543_v43 = vadd.f32 %v1542_v31, %v1541_v23  ;;  %v1556_v48 = vsel %vm1504_vm2, %v3037_v33, 0.0  ;;  %v1573_v26 = vadd.f32 %v3637_v17, %v1571_v56  ;;  %v1487_v7 = vadd.f32 %v1479_v13, %v1471_v25  ;;  %1979 = vrot.lane.b32.xlu2 %v2237_v21, %s2298_s16  ;;  %2035 = vrot.lane.b32.xlu0 %v2237_v21, %s2297_s20  ;;  %v3641_v21 = vld [vmem:[#allocation5_spill] sm:$0xff] }
 0x1b3   : > { %v1515_v53 = vadd.f32 %v1514_v24, %v1513_v50  ;;  %v1555_v60 = vadd.f32 %v1554_v52, %v1553_v1  ;;  %v1518_v39 = vsel %vm1504_vm2, %v2999_v55, 0.0  ;;  %v1558_v9 = vsel %vm1504_vm2, %v2936_v22, 0.0 }
 0x1b4   : > { %v1575_v3 = vadd.f32 %v3638_v29, %v1573_v26  ;;  %v2299_v46 = vmov 256.0   ;;  %v3077_v4 = vadd.f32 %v2951_v15, %v1486_v11  ;;  %v1544_v8 = vrot.slane %v1543_v43, 2  ;;  %v3098_v26 = vld [vmem:[%s2579_s15 + $0x58] sm:$0xff] }
 0x1b5   : > { %2278 = vrcp.f32 %v2299_v46  ;;  %v1517_v44 = vadd.f32 %v1516_v51, %v1515_v53  ;;  %v1557_v63 = vadd.f32 %v1556_v48, %v1555_v60  ;;  %v1560_v10 = vsel %vm1504_vm2, %v3039_v34, 0.0 }
 0x1b6   : > { %v1577_v61 = vadd.f32 %v3639_v41, %v1575_v3  ;;  %v1580_v19 = vsel %vm1504_vm2, %v2938_v32, 0.0  ;;  %v3085_v59 = vadd.f32 %v2953_v58, %v1487_v7  ;;  %v1562_v15 = vsel %vm1504_vm2, %v3058_v36, 0.0 }
 0x1b7   : > { %v1519_v13 = vadd.f32 %v1518_v39, %v1517_v44  ;;  %v1559_v12 = vadd.f32 %v1558_v9, %v1557_v63  ;;  %v1545_v28 = vadd.f32 %v1544_v8, %v1543_v43  ;;  %v1582_v25 = vsel %vm1504_vm2, %v3077_v4, 0.0 }
 0x1b8   : > { %v1579_v18 = vadd.f32 %v3640_v5, %v1577_v61  ;;  %v1584_v24 = vsel %vm1504_vm2, %v3085_v59, 0.0 }
 0x1b9   : > { %v1520_v23 = vrot.slane %v1519_v13, 4  ;;  %v1561_v57 = vadd.f32 %v1560_v10, %v1559_v12  ;;  %v1546_v50 = vrot.slane %v1545_v28, 1 }
 0x1ba   : > { %v1581_v40 = vadd.f32 %v1580_v19, %v1579_v18  ;;  %1985 = vrot.lane.b32.xlu2 %v3098_v26, %s2298_s16 }
 0x1bb   : > { %v2279_v58 = vpop.eup %2278  ;;  %v1521_v45 = vadd.f32 %v1520_v23, %v1519_v13  ;;  %v1563_v0 = vadd.f32 %v1562_v15, %v1561_v57  ;;  %v1547_v53 = vadd.f32 %v1546_v50, %v1545_v28  ;;  %v2282_v13 = vld [vmem:[%s2579_s15 + $0x18] sm:$0xff]  ;;  %v3642_v28 = vld [vmem:[#allocation6_spill] sm:$0xff] }
 0x1bc   : > { %v1594_v31 = vmul.f32 256.0, %v2279_v58  ;;  %v1583_v52 = vadd.f32 %v1582_v25, %v1581_v40  ;;  %vm1598_vm0 = vweird.f32 %v2279_v58  ;;  %v3643_v25 = vld [vmem:[#allocation10_spill] sm:$0xff] }
 0x1bd   : > { %v1522_v11 = vrot.slane %v1521_v45, 2  ;;  %v1564_v1 = vrot.slane %v1563_v0, 4 }
 0x1be   : > { %v1585_v56 = vadd.f32 %v1584_v24, %v1583_v52  ;;  %v1595_v48 = vsub.f32 1.0, %v1594_v31  ;;  %v3645_v24 = vld [vmem:[#allocation24_spill] sm:$0xff] }
 0x1bf   : > { %v1523_v51 = vadd.f32 %v1522_v11, %v1521_v45  ;;  %v1565_v43 = vadd.f32 %v1564_v1, %v1563_v0  ;;  %v3644_v45 = vld [vmem:[#allocation17_spill] sm:$0xff]  ;;  %v2283_v0 = vld [vmem:[%s2579_s15 + $0x48] sm:$0xff] }
 0x1c0   : > { %v1586_v17 = vrot.slane %v1585_v56, 4  ;;  %v1596_v3 = vmul.f32 %v2279_v58, %v1595_v48 }
 0x1c1   : > { %v1524_v7 = vrot.slane %v1523_v51, 1  ;;  %v1566_v60 = vrot.slane %v1565_v43, 2 }
 0x1c2   : > { %v1587_v39 = vadd.f32 %v1586_v17, %v1585_v56  ;;  %v1597_v41 = vadd.f32 %v2279_v58, %v1596_v3  ;;  %2033 = vrot.lane.b32.xlu2 %v2282_v13, %s2297_s20 }
 0x1c3   : > { %v1525_v9 = vadd.f32 %v1524_v7, %v1523_v51  ;;  %v1567_v29 = vadd.f32 %v1566_v60, %v1565_v43 }
 0x1c4   : > { %v1588_v46 = vrot.slane %v1587_v39, 2  ;;  %v3104_v15 = vsel %vm1598_vm0, %v2279_v58, %v1597_v41 }
 0x1c5   : > { %v1548_v44 = vadd.f32 %v1547_v53, %v1525_v9  ;;  %v1568_v8 = vrot.slane %v1567_v29, 1 }
 0x1c6   : > { %v1589_v63 = vadd.f32 %v1588_v46, %v1587_v39 }
 0x1c7   : > { %v1569_v10 = vadd.f32 %v1568_v8, %v1567_v29 }
 0x1c8   : > { %v1590_v61 = vrot.slane %v1589_v63, 1 }
 0x1c9   : > { %v1570_v19 = vadd.f32 %v1569_v10, %v1548_v44 }
 0x1ca   : > { %v1591_v12 = vadd.f32 %v1590_v61, %v1589_v63  ;;  %2039 = vrot.lane.b32.xlu2 %v2283_v0, %s2297_s20 }
 0x1cc   : > { %v1592_v5 = vadd.f32 %v1591_v12, %v1570_v19 }
 0x1ce   : > { %v3107_v18 = vmul.f32 %v3104_v15, %v1592_v5  ;;  %v3646_v5 = vld [vmem:[#allocation9_spill] sm:$0xff] }
 0x1d0   : > { %v3111_v23 = vsub.f32 %v3641_v21, %v3107_v18  ;;  %v3115_v57 = vsub.f32 %v3642_v28, %v3107_v18  ;;  %v3119_v40 = vsub.f32 %v3643_v25, %v3107_v18  ;;  %v3123_v58 = vsub.f32 %v3644_v45, %v3107_v18  ;;  %v3647_v28 = vld [vmem:[#allocation14_spill] sm:$0xff] }
 0x1d1   : > { %v3129_v31 = vsub.f32 %v3645_v24, %v3107_v18  ;;  %v3139_v1 = vsub.f32 %v2924_v37, %v3107_v18  ;;  %v3147_v17 = vsub.f32 %v2977_v38, %v3107_v18  ;;  %v3154_v37 = vsub.f32 %v3016_v27, %v3107_v18 }
 0x1d2   : > { %v1647_v52 = vmul.f32 %v3111_v23, %v3111_v23  ;;  %v1648_v11 = vmul.f32 %v3115_v57, %v3115_v57  ;;  %v1649_v50 = vmul.f32 %v3119_v40, %v3119_v40  ;;  %v1650_v56 = vmul.f32 %v3123_v58, %v3123_v58 }
 0x1d3   : > { %v1651_v7 = vmul.f32 %v3129_v31, %v3129_v31  ;;  %v1652_v39 = vmul.f32 %v3139_v1, %v3139_v1  ;;  %v1653_v38 = vmul.f32 %v3147_v17, %v3147_v17  ;;  %v3164_v46 = vsub.f32 %v2975_v42, %v3107_v18 }
 0x1d4   : > { %v1655_v51 = vsel %vm1504_vm2, %v1647_v52, 0.0  ;;  %v1656_v43 = vsel %vm1504_vm2, %v1648_v11, 0.0  ;;  %v1658_v53 = vsel %vm1504_vm2, %v1649_v50, 0.0  ;;  %v1660_v9 = vsel %vm1504_vm2, %v1650_v56, 0.0 }
 0x1d5   : > { %v1657_v48 = vadd.f32 %v1656_v43, %v1655_v51  ;;  %v1662_v3 = vsel %vm1504_vm2, %v1651_v7, 0.0  ;;  %v1654_v27 = vmul.f32 %v3154_v37, %v3154_v37  ;;  %v1664_v8 = vsel %vm1504_vm2, %v1652_v39, 0.0 }
 0x1d6   : > { %v3171_v63 = vsub.f32 %v2979_v47, %v3107_v18  ;;  %v3175_v10 = vsub.f32 %v2981_v14, %v3107_v18  ;;  %v3179_v61 = vsub.f32 %v2983_v2, %v3107_v18  ;;  %v1666_v42 = vsel %vm1504_vm2, %v1653_v38, 0.0  ;;  %v3649_v38 = vld [vmem:[#allocation26_spill] sm:$0xff] }
 0x1d7   : > { %v1659_v60 = vadd.f32 %v1658_v53, %v1657_v48  ;;  %v3184_v19 = vsub.f32 %v3039_v34, %v3107_v18  ;;  %v1609_v13 = vmul.f32 %v3164_v46, %v3164_v46  ;;  %v1668_v14 = vsel %vm1504_vm2, %v1654_v27, 0.0 }
 0x1d8   : > { %v1610_v47 = vmul.f32 %v3171_v63, %v3171_v63  ;;  %v3193_v12 = vsub.f32 %v2936_v22, %v3107_v18  ;;  %v3197_v2 = vsub.f32 %v2985_v54, %v3107_v18  ;;  %v1611_v34 = vmul.f32 %v3175_v10, %v3175_v10  ;;  %v3648_v54 = vld [vmem:[#allocation21_spill] sm:$0xff] }
 0x1d9   : > { %v1661_v29 = vadd.f32 %v1660_v9, %v1659_v60  ;;  %v3203_v21 = vsub.f32 %v3646_v5, %v3107_v18  ;;  %v3207_v25 = vsub.f32 %v3647_v28, %v3107_v18  ;;  %v3211_v45 = vsub.f32 %v2989_v62, %v3107_v18 }
 0x1da   : > { %v1617_v22 = vsel %vm1504_vm2, %v1609_v13, 0.0  ;;  %v3216_v24 = vsub.f32 %v3648_v54, %v3107_v18  ;;  %v1612_v52 = vmul.f32 %v3179_v61, %v3179_v61  ;;  %v1618_v11 = vsel %vm1504_vm2, %v1610_v47, 0.0 }
 0x1db   : > { %v1663_v44 = vadd.f32 %v1662_v3, %v1661_v29  ;;  %v3223_v50 = vmul.f32 %v3184_v19, %v3184_v19  ;;  %v3227_v62 = vsub.f32 %v2991_v35, %v3107_v18  ;;  %v3231_v56 = vsub.f32 %v2999_v55, %v3107_v18 }
 0x1dc   : > { %v1619_v51 = vadd.f32 %v1618_v11, %v1617_v22  ;;  %v1613_v43 = vmul.f32 %v3197_v2, %v3197_v2  ;;  %v1620_v48 = vsel %vm1504_vm2, %v1611_v34, 0.0  ;;  %v3238_v7 = vsub.f32 %v3022_v6, %v3107_v18 }
 0x1dd   : > { %v1665_v41 = vadd.f32 %v1664_v8, %v1663_v44  ;;  %v3242_v53 = vsub.f32 %v3024_v30, %v3107_v18  ;;  %v1614_v35 = vmul.f32 %v3211_v45, %v3211_v45  ;;  %v3248_v55 = vsub.f32 %v3026_v49, %v3107_v18 }
 0x1de   : > { %v1621_v60 = vadd.f32 %v1620_v48, %v1619_v51  ;;  %v3252_v39 = vsub.f32 %v3035_v20, %v3107_v18  ;;  %v1622_v6 = vsel %vm1504_vm2, %v1612_v52, 0.0  ;;  %v1685_v29 = vmul.f32 %v3238_v7, %v3238_v7 }
 0x1df   : > { %v1667_v0 = vadd.f32 %v1666_v42, %v1665_v41  ;;  %v1686_v30 = vmul.f32 %v3242_v53, %v3242_v53  ;;  %v3261_v3 = vsub.f32 %v3649_v38, %v3107_v18  ;;  %v3265_v49 = vsub.f32 %v3037_v33, %v3107_v18 }
 0x1e0   : > { %v1623_v27 = vadd.f32 %v1622_v6, %v1621_v60  ;;  %v1687_v20 = vmul.f32 %v3248_v55, %v3248_v55  ;;  %v1724_v44 = vmul.f32 %v3203_v21, %v3203_v21  ;;  %v1615_v8 = vmul.f32 %v3227_v62, %v3227_v62 }
 0x1e1   : > { %v1669_v9 = vadd.f32 %v1668_v14, %v1667_v0  ;;  %v1624_v41 = vsel %vm1504_vm2, %v1613_v43, 0.0  ;;  %v1693_v42 = vsel %vm1504_vm2, %v1685_v29, 0.0  ;;  %v1725_v13 = vmul.f32 %v3207_v25, %v3207_v25 }
 0x1e2   : > { %v1625_v47 = vadd.f32 %v1624_v41, %v1623_v27  ;;  %v1688_v33 = vmul.f32 %v3252_v39, %v3252_v39  ;;  %v1694_v14 = vsel %vm1504_vm2, %v1686_v30, 0.0  ;;  %v1616_v5 = vmul.f32 %v3231_v56, %v3231_v56 }
 0x1e3   : > { %v1670_v34 = vrot.slane %v1669_v9, 4  ;;  %v1626_v28 = vsel %vm1504_vm2, %v1614_v35, 0.0  ;;  %v1695_v22 = vadd.f32 %v1694_v14, %v1693_v42  ;;  %v1689_v54 = vmul.f32 %v3265_v49, %v3265_v49 }
 0x1e4   : > { %v1627_v0 = vadd.f32 %v1626_v28, %v1625_v47  ;;  %v1696_v52 = vsel %vm1504_vm2, %v1687_v20, 0.0  ;;  %v3288_v11 = vsub.f32 %v3045_v16, %v3107_v18  ;;  %v1732_v51 = vsel %vm1504_vm2, %v1724_v44, 0.0 }
 0x1e5   : > { %v1628_v43 = vsel %vm1504_vm2, %v1615_v8, 0.0  ;;  %v3294_v48 = vsub.f32 %v3058_v36, %v3107_v18  ;;  %v1697_v35 = vadd.f32 %v1696_v52, %v1695_v22  ;;  %v1690_v6 = vmul.f32 %v3193_v12, %v3193_v12  ;;  %v3306_v36 = vpop.permute.xlu2 %1817 }
 0x1e6   : > { %v1629_v60 = vadd.f32 %v1628_v43, %v1627_v0  ;;  %v1698_v29 = vsel %vm1504_vm2, %v1688_v33, 0.0  ;;  %v1723_v30 = vmul.f32 %v3288_v11, %v3288_v11  ;;  %v1671_v16 = vadd.f32 %v1670_v34, %v1669_v9 }
 0x1e7   : > { %v3303_v38 = vsub.f32 %v2938_v32, %v3107_v18  ;;  %v1630_v27 = vsel %vm1504_vm2, %v1616_v5, 0.0  ;;  %v1699_v20 = vadd.f32 %v1698_v29, %v1697_v35  ;;  %v1726_v44 = vmul.f32 %v3216_v24, %v3216_v24 }
 0x1e8   : > { %v1631_v8 = vadd.f32 %v1630_v27, %v1629_v60  ;;  %v1700_v41 = vsel %vm1504_vm2, %v1689_v54, 0.0  ;;  %v1731_v42 = vsel %vm1504_vm2, %v1723_v30, 0.0  ;;  %v3314_v9 = vsub.f32 %v3077_v4, %v3107_v18 }
 0x1e9   : > { %v1727_v32 = vmul.f32 %v3261_v3, %v3261_v3  ;;  %v1701_v47 = vadd.f32 %v1700_v41, %v1699_v20  ;;  %v1733_v33 = vadd.f32 %v1732_v51, %v1731_v42  ;;  %v1734_v14 = vsel %vm1504_vm2, %v1725_v13, 0.0 }
 0x1ea   : > { %v1632_v34 = vrot.slane %v1631_v8, 4  ;;  %v1692_v5 = vmul.f32 %v3294_v48, %v3294_v48  ;;  %v1702_v28 = vsel %vm1504_vm2, %v1690_v6, 0.0  ;;  %v1672_v22 = vrot.slane %v1671_v16, 2 }
 0x1eb   : > { %v1728_v0 = vmul.f32 %v3303_v38, %v3303_v38  ;;  %v1703_v54 = vadd.f32 %v1702_v28, %v1701_v47  ;;  %v1735_v4 = vadd.f32 %v1734_v14, %v1733_v33  ;;  %v1736_v52 = vsel %vm1504_vm2, %v1726_v44, 0.0 }
 0x1ec   : > { %v1633_v43 = vadd.f32 %v1632_v34, %v1631_v8  ;;  %v1704_v51 = vsel %vm1504_vm2, %v3223_v50, 0.0  ;;  %v3329_v13 = vsub.f32 %v3085_v59, %v3107_v18  ;;  %v1729_v6 = vmul.f32 %v3314_v9, %v3314_v9 }
 0x1ed   : > { %v1705_v35 = vadd.f32 %v1704_v51, %v1703_v54  ;;  %v1737_v60 = vadd.f32 %v1736_v52, %v1735_v4  ;;  %v1738_v29 = vsel %vm1504_vm2, %v1727_v32, 0.0  ;;  %v1706_v27 = vsel %vm1504_vm2, %v1692_v5, 0.0  ;;  %v1824_v47 = vpop.permute.xlu2 %1823 }
 0x1ee   : > { %v1634_v30 = vrot.slane %v1633_v43, 2  ;;  %v1673_v20 = vadd.f32 %v1672_v22, %v1671_v16  ;;  %v1740_v41 = vsel %vm1504_vm2, %v1728_v0, 0.0  ;;  %v1730_v59 = vmul.f32 %v3329_v13, %v3329_v13 }
 0x1ef   : > { %v1707_v44 = vadd.f32 %v1706_v27, %v1705_v35  ;;  %v1739_v8 = vadd.f32 %v1738_v29, %v1737_v60  ;;  %v1742_v33 = vsel %vm1504_vm2, %v1729_v6, 0.0 }
 0x1f0   : > { %v1635_v50 = vadd.f32 %v1634_v30, %v1633_v43  ;;  %v1674_v34 = vrot.slane %v1673_v20, 1  ;;  %v1744_v5 = vsel %vm1504_vm2, %v1730_v59, 0.0 }
 0x1f1   : > { %v1708_v18 = vrot.slane %v1707_v44, 4  ;;  %v1741_v42 = vadd.f32 %v1740_v41, %v1739_v8 }
 0x1f2   : > { %v1636_v14 = vrot.slane %v1635_v50, 1  ;;  %v1675_v4 = vadd.f32 %v1674_v34, %v1673_v20  ;;  %v3345_v20 = vpop.permute.xlu1 %1815 }
 0x1f3   : > { %v1709_v32 = vadd.f32 %v1708_v18, %v1707_v44  ;;  %v1743_v28 = vadd.f32 %v1742_v33, %v1741_v42 }
 0x1f4   : > { %v1637_v54 = vadd.f32 %v1636_v14, %v1635_v50 }
 0x1f5   : > { %v1710_v16 = vrot.slane %v1709_v32, 2  ;;  %v1745_v22 = vadd.f32 %v1744_v5, %v1743_v28  ;;  %v3340_v29 = vpop.permute.xlu2 %1871 }
 0x1f6   : > { %v1676_v35 = vadd.f32 %v1675_v4, %v1637_v54 }
 0x1f7   : > { %v1711_v0 = vadd.f32 %v1710_v16, %v1709_v32  ;;  %v1746_v52 = vrot.slane %v1745_v22, 4 }
 0x1f9   : > { %v1712_v43 = vrot.slane %v1711_v0, 1  ;;  %v1747_v51 = vadd.f32 %v1746_v52, %v1745_v22 }
 0x1fa   : > { %v1822_v28 = vpop.permute.xlu1 %1821 }
 0x1fb   : > { %v1748_v60 = vrot.slane %v1747_v51, 2  ;;  %v1713_v30 = vadd.f32 %v1712_v43, %v1711_v0 }
 0x1fd   : > { %v1749_v6 = vadd.f32 %v1748_v60, %v1747_v51  ;;  %v1714_v27 = vadd.f32 %v1713_v30, %v1676_v35  ;;  %v3343_v18 = vpop.permute.xlu2 %1877 }
 0x1ff   : > { %v1750_v8 = vrot.slane %v1749_v6, 1 }
 0x201   : > { %v1751_v44 = vadd.f32 %v1750_v8, %v1749_v6 }
 0x202   : > { %v1828_v35 = vpop.permute.xlu1 %1827 }
 0x203   : > { %v1752_v41 = vadd.f32 %v1751_v44, %v1714_v27 }
 0x205   : > { %v1753_v59 = vmul.f32 %v1752_v41, %v3104_v15  ;;  %v3347_v33 = vpop.permute.xlu2 %1883 }
 0x207   : > { %v1754_v50 = vadd.f32 1e-05, %v1753_v59 }
 0x209   : > { %2280 = vrsqrt.f32 %v1754_v50  ;;  %vm1761_vm4 = vweird.f32 %v1754_v50 }
 0x20d   : > { %v1980_v22 = vpop.permute.xlu2 %1979 }
 0x20f   : > { %v2281_v42 = vpop.eup %2280 }
 0x210   : > { %v1756_v14 = vmul.f32 %v2281_v42, %v1754_v50  ;;  %vm1762_vm3 = vweird.f32 %v2281_v42 }
 0x211   : > { %vm1763_vm5 = vmor %vm1761_vm4, %vm1762_vm3 }
 0x212   : > { %v1757_v34 = vmul.f32 %v2281_v42, %v1756_v14 }
 0x214   : > { %v1758_v32 = vmul.f32 0.5, %v1757_v34 }
 0x215   : > { %v1986_v8 = vpop.permute.xlu2 %1985 }
 0x216   : > { %v1759_v5 = vsub.f32 1.5, %v1758_v32 }
 0x218   : > { %v1760_v16 = vmul.f32 %v2281_v42, %v1759_v5 }
 0x21a   : > { %v3349_v15 = vsel %vm1763_vm5, %v2281_v42, %v1760_v16 }
 0x21b   : > { %v1769_v54 = vmul.f32 %v3349_v15, %v3197_v2  ;;  %v1772_v4 = vmul.f32 %v3349_v15, %v3231_v56  ;;  %v1767_v0 = vmul.f32 %v3349_v15, %v3175_v10  ;;  %v1770_v52 = vmul.f32 %v3349_v15, %v3211_v45 }
 0x21c   : > { %v1928_v45 = vmul.f32 %v3349_v15, %v3248_v55  ;;  %v1931_v56 = vmul.f32 %v3349_v15, %v3193_v12  ;;  %v1789_v55 = vmul.f32 %v3349_v15, %v3111_v23  ;;  %v1794_v34 = vmul.f32 %v3349_v15, %v3139_v1 }
 0x21d   : > { %v1777_v43 = vmax.f32 %v1769_v54, 0.0  ;;  %v1780_v51 = vmax.f32 %v1772_v4, 0.0  ;;  %v1775_v60 = vmax.f32 %v1767_v0, 0.0  ;;  %v1778_v30 = vmax.f32 %v1770_v52, 0.0  ;;  %v1814_v52 = vpop.permute.xlu0 %1813 }
 0x21e   : > { %v1936_v44 = vmax.f32 %v1928_v45, 0.0  ;;  %v1939_v41 = vmax.f32 %v1931_v56, 0.0  ;;  %v1797_v14 = vmax.f32 %v1789_v55, 0.0  ;;  %v1802_v32 = vmax.f32 %v1794_v34, 0.0 }
 0x21f   : > { %v3360_v6 = vsel %vm1504_vm2, %v1777_v43, %v1822_v28  ;;  %v3363_v27 = vsel %vm1504_vm2, %v1780_v51, %v1828_v35  ;;  %v3367_v2 = vsel %vm1504_vm2, %v1775_v60, %v3306_v36  ;;  %v3370_v10 = vsel %vm1504_vm2, %v1778_v30, %v1824_v47  ;;  %v1870_v30 = vpop.permute.xlu1 %1869 }
 0x220   : > { %v3377_v59 = vsel %vm1504_vm2, %v1936_v44, %v1980_v22  ;;  %v3380_v50 = vsel %vm1504_vm2, %v1939_v41, %v1986_v8  ;;  %v1791_v36 = vmul.f32 %v3349_v15, %v3119_v40  ;;  %v1790_v47 = vmul.f32 %v3349_v15, %v3115_v57  ;;  %1845 = vrot.lane.b32.xlu2 %v1797_v14, %s2297_s20  ;;  %v2285_v44 = vld [vmem:[%s2579_s15 + $0x78] sm:$0xff] }
 0x221   : > { %v1793_v40 = vmul.f32 %v3349_v15, %v3129_v31  ;;  %v1792_v57 = vmul.f32 %v3349_v15, %v3123_v58  ;;  %v1953_v5 = vmul.f32 %v3349_v15, %v3207_v25  ;;  %v1796_v1 = vmul.f32 %v3349_v15, %v3154_v37 }
 0x222   : > { %v1799_v42 = vmax.f32 %v1791_v36, 0.0  ;;  %v1798_v12 = vmax.f32 %v1790_v47, 0.0  ;;  %v1795_v31 = vmul.f32 %v3349_v15, %v3147_v17  ;;  %v1956_v54 = vmul.f32 %v3349_v15, %v3303_v38  ;;  %v3438_v47 = vpop.permute.xlu2 %2033 }
 0x223   : > { %v1801_v23 = vmax.f32 %v1793_v40, 0.0  ;;  %v1800_v28 = vmax.f32 %v1792_v57, 0.0  ;;  %v1961_v16 = vmax.f32 %v1953_v5, 0.0  ;;  %v1804_v58 = vmax.f32 %v1796_v1, 0.0 }
 0x224   : > { %1849 = vrot.lane.b32.xlu1 %v1799_v42, %s2297_s20  ;;  %1847 = vrot.lane.b32.xlu0 %v1798_v12, %s2297_s20  ;;  %v1803_v22 = vmax.f32 %v1795_v31, 0.0  ;;  %v1952_v25 = vmul.f32 %v3349_v15, %v3203_v21  ;;  %v1951_v37 = vmul.f32 %v3349_v15, %v3288_v11  ;;  %v1964_v17 = vmax.f32 %v1956_v54, 0.0  ;;  %v2284_v11 = vld [vmem:[%s2579_s15 + $0x68] sm:$0xff] }
 0x225   : > { %v1955_v43 = vmul.f32 %v3349_v15, %v3261_v3  ;;  %v1954_v38 = vmul.f32 %v3349_v15, %v3216_v24  ;;  %v1958_v35 = vmul.f32 %v3349_v15, %v3329_v13  ;;  %v1957_v60 = vmul.f32 %v3349_v15, %v3314_v9  ;;  %v1820_v3 = vpop.permute.xlu0 %1819 }
 0x226   : > { %v1960_v4 = vmax.f32 %v1952_v25, 0.0  ;;  %v1959_v0 = vmax.f32 %v1951_v37, 0.0  ;;  %v1765_v14 = vmul.f32 %v3349_v15, %v3164_v46 }
 0x227   : > { %v1963_v21 = vmax.f32 %v1955_v43, 0.0  ;;  %v1962_v51 = vmax.f32 %v1954_v38, 0.0  ;;  %v1966_v45 = vmax.f32 %v1958_v35, 0.0  ;;  %v1965_v24 = vmax.f32 %v1957_v60, 0.0  ;;  %v1876_v8 = vpop.permute.xlu1 %1875 }
 0x228   : > { %1851 = vrot.lane.b32.xlu2 %v1800_v28, %s2297_s20  ;;  %v1773_v40 = vmax.f32 %v1765_v14, 0.0 }
 0x22a   : > { %v3442_v12 = vpop.permute.xlu2 %2039  ;;  %v1893_v57 = vsel %vm1504_vm2, %v1773_v40, %v1814_v52  ;;  %v1926_v52 = vmul.f32 %v3349_v15, %v3238_v7  ;;  %v1929_v7 = vmul.f32 %v3349_v15, %v3252_v39 }
 0x22c   : > { %1855 = vrot.lane.b32.xlu1 %v1802_v32, %s2297_s20  ;;  %1853 = vrot.lane.b32.xlu0 %v1801_v23, %s2297_s20  ;;  %v1768_v32 = vmul.f32 %v3349_v15, %v3179_v61  ;;  %v1937_v39 = vmax.f32 %v1929_v7, 0.0 }
 0x22d   : > { %v1826_v56 = vpop.permute.xlu0 %1825 }
 0x22e   : > { %v1776_v1 = vmax.f32 %v1768_v32, 0.0 }
 0x22f   : > { %v1882_v41 = vpop.permute.xlu1 %1881 }
 0x230   : > { %1857 = vrot.lane.b32.xlu2 %v1803_v22, %s2297_s20 }
 0x234   : > { %2011 = vrot.lane.b32.xlu1 %v1961_v16, %s2297_s20  ;;  %1859 = vrot.lane.b32.xlu0 %v1804_v58, %s2297_s20  ;;  %v1896_v16 = vsel %vm1504_vm2, %v1776_v1, %v1820_v3  ;;  %v1771_v58 = vmul.f32 %v3349_v15, %v3227_v62 }
 0x235   : > { %v1874_v13 = vpop.permute.xlu0 %1873 }
 0x236   : > { %v1779_v25 = vmax.f32 %v1771_v58, 0.0 }
 0x237   : > { %v3436_v36 = vpop.permute.xlu1 %1977 }
 0x238   : > { %2007 = vrot.lane.b32.xlu2 %v1959_v0, %s2297_s20  ;;  %v1899_v0 = vsel %vm1504_vm2, %v1779_v25, %v1826_v56 }
 0x23c   : > { %2017 = vrot.lane.b32.xlu1 %v1964_v17, %s2297_s20  ;;  %2009 = vrot.lane.b32.xlu0 %v1960_v4, %s2297_s20  ;;  %v1766_v4 = vmul.f32 %v3349_v15, %v3171_v63 }
 0x23d   : > { %v1880_v9 = vpop.permute.xlu0 %1879 }
 0x23f   : > { %v3440_v42 = vpop.permute.xlu1 %1983 }
 0x240   : > { %2013 = vrot.lane.b32.xlu2 %v1962_v51, %s2297_s20  ;;  %v1934_v51 = vmax.f32 %v1926_v52, 0.0 }
 0x244   : > { %2043 = vrot.lane.b32.xlu1 %v2284_v11, %s2297_s20  ;;  %2015 = vrot.lane.b32.xlu0 %v1963_v21, %s2297_s20  ;;  %v1774_v21 = vmax.f32 %v1766_v4, 0.0 }
 0x245   : > { %v1976_v55 = vpop.permute.xlu0 %1975 }
 0x246   : > { %v1894_v63 = vsel %vm1504_vm2, %v1774_v21, %v3345_v20  ;;  %v2055_v60 = vsel %vm1504_vm2, %v1934_v51, %v1976_v55 }
 0x247   : > { %v3446_v34 = vpop.permute.xlu1 %1989 }
 0x248   : > { %2019 = vrot.lane.b32.xlu2 %v1965_v24, %s2297_s20 }
 0x24c   : > { %2021 = vrot.lane.b32.xlu0 %v1966_v45, %s2297_s20 }
 0x24f   : > { %v2032_v5 = vpop.permute.xlu1 %2031 }
 0x250   : > { %2045 = vrot.lane.b32.xlu2 %v2285_v44, %s2297_s20 }
 0x254   : > { %2041 = vrot.lane.b32.xlu0 %v3098_v26, %s2297_s20  ;;  %v1982_v26 = vpop.permute.xlu0 %1981 }
 0x257   : > { %v2038_v37 = vpop.permute.xlu1 %2037 }
 0x25c   : > { %v3462_v31 = vpop.permute.xlu0 %1987 }
 0x264   : > { %v2036_v17 = vpop.permute.xlu0 %2035 }
 0x27a   : > { %v1846_v23 = vpop.permute.xlu2 %1845 }
 0x27b   : > { %v1901_v46 = vsel %vm415_vm6, %v1893_v57, %v1846_v23 }
 0x27c   : > { %v1910_v28 = vsel %vm1909_vm8, %v1901_v46, %v1870_v30 }
 0x27d   : > { %1918 = vst.msk [vmem:[%s3453_s19] sm:$0xff] %vm432_vm7, %v1910_v28 }
 0x282   : > { %v1852_v22 = vpop.permute.xlu2 %1851 }
 0x283   : > { %v1904_v61 = vsel %vm415_vm6, %v1896_v16, %v1852_v22 }
 0x284   : > { %v1913_v54 = vsel %vm1909_vm8, %v1904_v61, %v1876_v8  ;;  %v1933_v61 = vmul.f32 %v3349_v15, %v3294_v48 }
 0x285   : > { %1921 = vst.msk [vmem:[%s3453_s19 + $0x30] sm:$0xff] %vm432_vm7, %v1913_v54 }
 0x28a   : > { %v1858_v43 = vpop.permute.xlu2 %1857 }
 0x28b   : > { %v1907_v62 = vsel %vm415_vm6, %v1899_v0, %v1858_v43 }
 0x28c   : > { %v1916_v38 = vsel %vm1909_vm8, %v1907_v62, %v1882_v41 }
 0x28d   : > { %1924 = vst.msk [vmem:[%s3453_s19 + $0x60] sm:$0xff] %vm432_vm7, %v1916_v38 }
 0x292   : > { %v2008_v45 = vpop.permute.xlu2 %2007 }
 0x293   : > { %v2063_v20 = vsel %vm415_vm6, %v2055_v60, %v2008_v45 }
 0x294   : > { %v2071_v8 = vsel %vm1909_vm8, %v2063_v20, %v2032_v5 }
 0x295   : > { %2243 = vst.msk [vmem:[%s3453_s19 + $0x8] sm:$0xff] %vm432_vm7, %v2071_v8 }
 0x296   : > { %v1850_v11 = vpop.permute.xlu1 %1849  ;;  %v1848_v35 = vpop.permute.xlu0 %1847 }
 0x297   : > { %v1903_v3 = vsel %vm415_vm6, %v3367_v2, %v1850_v11  ;;  %v1902_v30 = vsel %vm415_vm6, %v1894_v63, %v1848_v35 }
 0x298   : > { %v1912_v24 = vsel %vm1909_vm8, %v1903_v3, %v1874_v13  ;;  %v1911_v56 = vsel %vm1909_vm8, %v1902_v30, %v3340_v29  ;;  %v2058_v13 = vsel %vm1504_vm2, %v1937_v39, %v1982_v26 }
 0x299   : > { %1920 = vst.msk [vmem:[%s3453_s19 + $0x20] sm:$0xff] %vm432_vm7, %v1912_v24 }
 0x29a   : > { %1919 = vst.msk [vmem:[%s3453_s19 + $0x10] sm:$0xff] %vm432_vm7, %v1911_v56  ;;  %v2014_v55 = vpop.permute.xlu2 %2013 }
 0x29b   : > { %v2066_v57 = vsel %vm415_vm6, %v2058_v13, %v2014_v55 }
 0x29c   : > { %v2074_v26 = vsel %vm1909_vm8, %v2066_v57, %v2038_v37 }
 0x29d   : > { %2246 = vst.msk [vmem:[%s3453_s19 + $0x38] sm:$0xff] %vm432_vm7, %v2074_v26 }
 0x29e   : > { %v1856_v2 = vpop.permute.xlu1 %1855  ;;  %v1854_v44 = vpop.permute.xlu0 %1853 }
 0x29f   : > { %v1906_v29 = vsel %vm415_vm6, %v3370_v10, %v1856_v2  ;;  %v1905_v41 = vsel %vm415_vm6, %v3360_v6, %v1854_v44  ;;  %v1927_v6 = vmul.f32 %v3349_v15, %v3242_v53  ;;  %v1932_v53 = vmul.f32 %v3349_v15, %v3184_v19 }
 0x2a0   : > { %v1915_v14 = vsel %vm1909_vm8, %v1906_v29, %v1880_v9  ;;  %v1914_v40 = vsel %vm1909_vm8, %v1905_v41, %v3343_v18 }
 0x2a1   : > { %1923 = vst.msk [vmem:[%s3453_s19 + $0x50] sm:$0xff] %vm432_vm7, %v1915_v14  ;;  %v1935_v28 = vmax.f32 %v1927_v6, 0.0  ;;  %v1940_v58 = vmax.f32 %v1932_v53, 0.0 }
 0x2a2   : > { %1922 = vst.msk [vmem:[%s3453_s19 + $0x40] sm:$0xff] %vm432_vm7, %v1914_v40  ;;  %v2020_v19 = vpop.permute.xlu2 %2019 }
 0x2a3   : > { %v2056_v5 = vsel %vm1504_vm2, %v1935_v28, %v3436_v36  ;;  %v2061_v36 = vsel %vm1504_vm2, %v1940_v58, %v3462_v31 }
 0x2a4   : > { %v2069_v54 = vsel %vm415_vm6, %v2061_v36, %v2020_v19 }
 0x2a6   : > { %v2012_v10 = vpop.permute.xlu1 %2011  ;;  %v1860_v32 = vpop.permute.xlu0 %1859 }
 0x2a7   : > { %v2065_v9 = vsel %vm415_vm6, %v3377_v59, %v2012_v10  ;;  %v1908_v18 = vsel %vm415_vm6, %v3363_v27, %v1860_v32  ;;  %v1930_v59 = vmul.f32 %v3349_v15, %v3265_v49 }
 0x2a8   : > { %v2073_v23 = vsel %vm1909_vm8, %v2065_v9, %v2036_v17  ;;  %v1917_v46 = vsel %vm1909_vm8, %v1908_v18, %v3347_v33 }
 0x2a9   : > { %2245 = vst.msk [vmem:[%s3453_s19 + $0x28] sm:$0xff] %vm432_vm7, %v2073_v23  ;;  %v1938_v22 = vmax.f32 %v1930_v59, 0.0 }
 0x2aa   : > { %1925 = vst.msk [vmem:[%s3453_s19 + $0x70] sm:$0xff] %vm432_vm7, %v1917_v46  ;;  %v2046_v4 = vpop.permute.xlu2 %2045 }
 0x2ab   : > { %v2059_v49 = vsel %vm1504_vm2, %v1938_v22, %v3440_v42  ;;  %v1941_v42 = vmax.f32 %v1933_v61, 0.0 }
 0x2ad   : > { %v2062_v48 = vsel %vm1504_vm2, %v1941_v42, %v3446_v34 }
 0x2ae   : > { %v2018_v27 = vpop.permute.xlu1 %2017  ;;  %v2010_v1 = vpop.permute.xlu0 %2009 }
 0x2af   : > { %v2064_v16 = vsel %vm415_vm6, %v2056_v5, %v2010_v1  ;;  %v2068_v43 = vsel %vm415_vm6, %v3380_v50, %v2018_v27 }
 0x2b0   : > { %v2072_v33 = vsel %vm1909_vm8, %v2064_v16, %v3438_v47 }
 0x2b1   : > { %2244 = vst.msk [vmem:[%s3453_s19 + $0x18] sm:$0xff] %vm432_vm7, %v2072_v33 }
 0x2b6   : > { %v2044_v25 = vpop.permute.xlu1 %2043  ;;  %v2016_v37 = vpop.permute.xlu0 %2015 }
 0x2b7   : > { %v2077_v47 = vsel %vm1909_vm8, %v2069_v54, %v2044_v25  ;;  %v2067_v17 = vsel %vm415_vm6, %v2059_v49, %v2016_v37 }
 0x2b8   : > { %2249 = vst.msk [vmem:[%s3453_s19 + $0x68] sm:$0xff] %vm432_vm7, %v2077_v47  ;;  %v2075_v31 = vsel %vm1909_vm8, %v2067_v17, %v3442_v12 }
 0x2b9   : > { %2247 = vst.msk [vmem:[%s3453_s19 + $0x48] sm:$0xff] %vm432_vm7, %v2075_v31 }
 0x2be   : > { %v2022_v15 = vpop.permute.xlu0 %2021 }
 0x2bf   : > { %v2070_v0 = vsel %vm415_vm6, %v2062_v48, %v2022_v15 }
 0x2c0   : > { %v2078_v52 = vsel %vm1909_vm8, %v2070_v0, %v2046_v4 }
 0x2c1   : > { %2250 = vst.msk [vmem:[%s3453_s19 + $0x78] sm:$0xff] %vm432_vm7, %v2078_v52 }
 0x2c6   : > { %v2042_v62 = vpop.permute.xlu0 %2041 }
 0x2c7   : > { %v2076_v12 = vsel %vm1909_vm8, %v2068_v43, %v2042_v62 }
 0x2c8   : > { %2248 = vst.msk [vmem:[%s3453_s19 + $0x58] sm:$0xff] %vm432_vm7, %v2076_v12 }
 0x2c9 PF: > { %s13_s12 = sadd.s32 1, %s2292_s12  }
 0x2ca   : > { %p10_p4 = scmp.ge.s32.totalorder %s13_s12, 4  }
 0x2cc   :  { %12 = sbr.rel (!%p10_p4) target bundleno = 1 (0x1), region = 70 }

</bundles_post_ra>
